<compile_context>
chip_gen: v5e
topology: v5e:2x2
jax: 0.10.0
libtpu: 0.0.40
codegen_flags: <defaults>
</compile_context>

<pallas_src>
import jax
import jax.numpy as jnp
from jax.experimental import pallas as pl
from jax.experimental.pallas import tpu as pltpu

_VMEM_LIMIT = 64 * 1024 * 1024


# ------------------------------ DFT matrix helpers ------------------------------ #
def _shifted_dft(n):
    """Re / Im of the n-point DFT matrix with fftshift of the output frequency
    axis baked into the column order (integer phase reduction keeps it exact)."""
    k = jnp.arange(n, dtype=jnp.int32)
    kk = (k[:, None] * k[None, :]) % n
    theta = (2.0 * jnp.pi / n) * kk.astype(jnp.float32)
    perm = (jnp.arange(n) - n // 2) % n          # fftshift = roll by n//2
    return jnp.cos(theta)[:, perm], (-jnp.sin(theta))[:, perm]


def _shifted_dft_cat(n):
    re, im = _shifted_dft(n)
    return jnp.concatenate([re, im], axis=1)     # (n, 2n)


def _shifted_dft2_cat(h, w):
    """[Re | Im] of the full 2-D DFT (h*w points) with both spatial fftshifts
    baked in; right-multiplying a row-major (rows, h*w) array by it gives the
    shifted 2-D spectrum."""
    hr, hi = _shifted_dft(h)
    wr, wi = _shifted_dft(w)
    re = jnp.kron(hr, wr) - jnp.kron(hi, wi)
    im = jnp.kron(hr, wi) + jnp.kron(hi, wr)
    return jnp.concatenate([re, im], axis=1)     # (h*w, 2*h*w)


# --------------------------- path A: small maps, paired -------------------------- #
def _fta_small_kernel(x2_ref, d2_ref, w1_ref, w2_ref, o_ref):
    """One fftshift batch pair (p, p + B//2), fully fused.

    x2_ref : (2, 1, C, HW)      x[p] and x[p + B//2]
    d2_ref : (HW, 2*HW)         [Re | Im] shifted 2-D DFT matrix
    w1_ref : (2*hid_p, 2*C)     cross-pair conv1 weight (channel shift folded in)
    w2_ref : (2*C, 2*hid_p)     block-diagonal conv2 weight
    o_ref  : (2, 1, C, HW)
    """
    _, _, C, HW = x2_ref.shape
    xx = x2_ref[...].reshape(2 * C, HW)
    # Single MXU matmul: K = HW, output already lane dense.
    y = jnp.dot(xx, d2_ref[...], preferred_element_type=jnp.float32)    # (2C, 2HW)
    re = y[:, :HW]
    im = y[:, HW:]
    mag = jnp.sqrt(re * re + im * im)                                   # (2C, HW)
    h = jnp.maximum(jnp.dot(w1_ref[...], mag,
                            preferred_element_type=jnp.float32), 0.0)   # (2hid_p, HW)
    logits = jnp.dot(w2_ref[...], h, preferred_element_type=jnp.float32)  # (2C, HW)
    o_ref[...] = (xx * jax.nn.sigmoid(logits)).reshape(2, 1, C, HW)


def _fta_small(x, w1, w2, hid_p, cperm):
    B, C, H, W = x.shape
    HW = H * W
    hid = w1.shape[0]

    d2 = _shifted_dft2_cat(H, W)                                        # (HW, 2HW)

    w1p = jnp.zeros((hid_p, C), jnp.float32).at[:hid, :].set(w1[:, cperm])
    w2p = jnp.zeros((C, hid_p), jnp.float32).at[:, :hid].set(w2)
    # out[p] is gated by the spectrum of x[p + B//2] and vice versa -> swap the
    # two C blocks of conv1, block-diagonal conv2.
    w1blk = (jnp.zeros((2 * hid_p, 2 * C), jnp.float32)
             .at[:hid_p, C:].set(w1p)
             .at[hid_p:, :C].set(w1p))
    w2blk = (jnp.zeros((2 * C, 2 * hid_p), jnp.float32)
             .at[:C, :hid_p].set(w2p)
             .at[C:, hid_p:].set(w2p))

    # [first half of the batch ; second half] so one block holds a whole pair.
    x2 = x.reshape(B, C, HW).reshape(2, B // 2, C, HW)

    out2 = pl.pallas_call(
        _fta_small_kernel,
        out_shape=jax.ShapeDtypeStruct((2, B // 2, C, HW), jnp.float32),
        grid_spec=pltpu.PrefetchScalarGridSpec(
            num_scalar_prefetch=0,
            grid=(B // 2,),
            in_specs=[
                pl.BlockSpec((2, 1, C, HW), lambda p: (0, p, 0, 0)),
                pl.BlockSpec((HW, 2 * HW), lambda p: (0, 0)),
                pl.BlockSpec((2 * hid_p, 2 * C), lambda p: (0, 0)),
                pl.BlockSpec((2 * C, 2 * hid_p), lambda p: (0, 0)),
            ],
            out_specs=pl.BlockSpec((2, 1, C, HW), lambda p: (0, p, 0, 0)),
        ),
        compiler_params=pltpu.CompilerParams(
            dimension_semantics=("parallel",),
            vmem_limit_bytes=_VMEM_LIMIT,
        ),
    )(x2, d2, w1blk, w2blk)
    return out2.reshape(B, C, H, W)


# ----------------------- path B: general, channel-tiled two-phase ----------------------- #
def _make_tiled_kernel(n_ct):
    def kernel(xs_ref, xm_ref, dh_ref, dw_ref, w1_ref, w2_ref, o_ref,
               h_acc, mag_scr):
        s = pl.program_id(1)

        @pl.when(s == 0)
        def _():
            h_acc[...] = jnp.zeros_like(h_acc)

        # -- phase 1 (s < n_ct): |fftshift(fft2(.))| of one channel tile -> h. --
        @pl.when(s < n_ct)
        def _():
            ct, hh, ww = xs_ref.shape
            xv = xs_ref[...]
            # H-direction DFT: (C_T*W, H) @ (H, 2H), channel/W folded into M.
            xt = jnp.transpose(xv, (0, 2, 1)).reshape(ct * ww, hh)
            yh = jnp.dot(xt, dh_ref[...], preferred_element_type=jnp.float32)
            # Fused W-direction DFT over the concatenated [Re | Im] rows:
            # one (C_T*2H, W) @ (W, 2W) matmul (single dw weight push).
            yt = jnp.transpose(yh.reshape(ct, ww, 2 * hh), (0, 2, 1))
            yt = yt.reshape(ct * 2 * hh, ww)
            z = jnp.dot(yt, dw_ref[...], preferred_element_type=jnp.float32)
            z4 = z.reshape(ct, 2, hh, 2 * ww)
            real = z4[:, 0, :, :ww] - z4[:, 1, :, ww:]
            imag = z4[:, 1, :, :ww] + z4[:, 0, :, ww:]
            mag3 = jnp.sqrt(real * real + imag * imag)          # (C_T, H, W)
            # Repack lane dense as (C_T, H*W) via VMEM scratch (static stores;
            # unmasked at production widths W >= 128).
            for k in range(hh):
                mag_scr[:, k * ww:(k + 1) * ww] = mag3[:, k, :]
            h_acc[...] += jnp.dot(w1_ref[...].T, mag_scr[...],
                                  preferred_element_type=jnp.float32)

        # -- phase 2 (s >= n_ct): conv2 + sigmoid gate + multiply per tile. --
        @pl.when(s >= n_ct)
        def _():
            h = jnp.maximum(h_acc[...], 0.0)
            logits = jnp.dot(w2_ref[...], h, preferred_element_type=jnp.float32)
            o_ref[...] = xm_ref[...] * jax.nn.sigmoid(logits)

    return kernel


def _fta_general(x, w1, w2, hid_p, cperm, c_tile):
    B, C, H, W = x.shape
    HW = H * W
    hid = w1.shape[0]

    if c_tile is None:
        c_tile = C
        for t in (32, 16, 8):    # ~2 MiB x tiles at H=W=128 -> fits v7x 64 MiB VMEM
            if C % t == 0:
                c_tile = min(C, t)
                break
    assert C % c_tile == 0 and (c_tile % 8 == 0 or c_tile == C)
    n_ct = C // c_tile

    dh = _shifted_dft_cat(H)                       # (H, 2H)
    dw = _shifted_dft_cat(W)                       # (W, 2W)
    # conv1 weight stored channel-major so channel tiles are sublane tiles:
    # w1cs[c, o] = w1[o, (c + C//2) % C]; hidden dim zero padded.
    w1cs = jnp.zeros((C, hid_p), jnp.float32).at[:, :hid].set(
        jnp.transpose(w1[:, cperm]))
    w2p = jnp.zeros((C, hid_p), jnp.float32).at[:, :hid].set(w2)
    x_flat = x.reshape(B, C, HW)

    out = pl.pallas_call(
        _make_tiled_kernel(n_ct),
        out_shape=jax.ShapeDtypeStruct((B, C, HW), jnp.float32),
        grid_spec=pltpu.PrefetchScalarGridSpec(
            num_scalar_prefetch=0,
            grid=(B, 2 * n_ct),                    # s < n_ct: FFT phase, else gate phase
            in_specs=[
                # spectrum source: batch part of fftshift folded into the index map;
                # pinned to the last tile during phase 2 (no wasted refetch).
                pl.BlockSpec((None, c_tile, H, W),
                             lambda b, s: ((b - B // 2) % B,
                                           jnp.minimum(s, n_ct - 1), 0, 0)),
                # gate input for the final multiply (same HBM array, flat view).
                pl.BlockSpec((None, c_tile, HW),
                             lambda b, s: (b, jnp.maximum(s - n_ct, 0), 0)),
                pl.BlockSpec((H, 2 * H), lambda b, s: (0, 0)),
                pl.BlockSpec((W, 2 * W), lambda b, s: (0, 0)),
                pl.BlockSpec((c_tile, hid_p),
                             lambda b, s: (jnp.minimum(s, n_ct - 1), 0)),
                pl.BlockSpec((c_tile, hid_p),
                             lambda b, s: (jnp.maximum(s - n_ct, 0), 0)),
            ],
            out_specs=pl.BlockSpec((None, c_tile, HW),
                                   lambda b, s: (b, jnp.maximum(s - n_ct, 0), 0)),
            scratch_shapes=[
                pltpu.VMEM((hid_p, HW), jnp.float32),    # persistent conv1 bottleneck
                pltpu.VMEM((c_tile, HW), jnp.float32),   # lane-dense |FFT| repack
            ],
        ),
        compiler_params=pltpu.CompilerParams(
            dimension_semantics=("parallel", "arbitrary"),
            vmem_limit_bytes=_VMEM_LIMIT,
        ),
    )(x, x_flat, dh, dw, w1cs, w2p)
    return out.reshape(B, C, H, W)


# ------------------------------------ wrapper ------------------------------------ #
def fourier_transform_attention(x, w1, w2, *, c_tile=None, small_hw_max=1024):
    """x: (B, C, H, W) f32; w1: (C//16, C) conv1 1x1 weight; w2: (C, C//16)."""
    B, C, H, W = x.shape
    hid = w1.shape[0]
    hid_p = max(8, ((hid + 7) // 8) * 8)
    cperm = (jnp.arange(C) + C // 2) % C            # channel part of fftshift

    if H * W <= small_hw_max and B % 2 == 0:
        return _fta_small(x, w1, w2, hid_p, cperm)
    return _fta_general(x, w1, w2, hid_p, cperm, c_tile)


# ----------------------- pure-JAX reference (verification only) ----------------------- #
def reference(x, w1, w2):
    xf = jnp.fft.fftshift(jnp.fft.fft2(x))          # fft2 over (-2,-1), shift ALL dims
    hf = jnp.abs(xf)
    h = jnp.maximum(jnp.einsum('oc,bchw->bohw', w1, hf), 0.0)
    logits = jnp.einsum('co,bohw->bchw', w2, h)
    return x * jax.nn.sigmoid(logits)


def _check(out, ref, name):
    if not bool(jnp.allclose(out, ref, atol=3e-3, rtol=3e-3)):
        raise AssertionError(
            f"{name}: mismatch vs reference, max abs err = "
            f"{float(jnp.max(jnp.abs(out - ref)))}")


if __name__ == "__main__":
    key = jax.random.PRNGKey(0)
    k1, k2, k3, k4 = jax.random.split(key, 4)

    # ---- small-map case: paired, single 2-D DFT matmul path -------------------- #
    B, C, H, W = 2, 32, 16, 16
    hid = C // 16
    x = jax.random.normal(k1, (B, C, H, W), dtype=jnp.float32)
    w1 = jax.random.uniform(k2, (hid, C), jnp.float32, -1.0, 1.0) / float(C) ** 0.5
    w2 = jax.random.uniform(k3, (C, hid), jnp.float32, -1.0, 1.0) / float(hid) ** 0.5

    out = jax.block_until_ready(jax.jit(fourier_transform_attention)(x, w1, w2))
    _check(out, reference(x, w1, w2), "small path")

    # ---- larger-map case: separable DFT, channel-tiled two-phase path ---------- #
    Hb = Wb = 64
    xb = jax.random.normal(k4, (B, C, Hb, Wb), dtype=jnp.float32)
    run_tiled = jax.jit(
        lambda a, b, c: fourier_transform_attention(a, b, c, c_tile=16))
    outb = jax.block_until_ready(run_tiled(xb, w1, w2))
    _check(outb, reference(xb, w1, w2), "tiled path")

    print("KERNEL_OK")
</pallas_src>

<mosaic_0001>
module attributes {stable_mosaic.version = 11 : i64} {
  func.func @_fta_small_kernel(%arg0: i32, %arg1: memref<2x1x32x256xf32, #tpu.memory_space<vmem>>, %arg2: memref<256x512xf32, #tpu.memory_space<vmem>>, %arg3: memref<16x64xf32, #tpu.memory_space<vmem>>, %arg4: memref<64x16xf32, #tpu.memory_space<vmem>>, %arg5: memref<2x1x32x256xf32, #tpu.memory_space<vmem>>) attributes {dimension_semantics = [#tpu.dimension_semantics<parallel>], iteration_bounds = array<i64: 1>, scalar_prefetch = 0 : i64, scratch_operands = 0 : i64, tpu.core_type = #tpu.core_type<tc>, window_params = [{transform_indices = @transform_0, window_bounds = array<i64: 2, 1, 32, 256>}, {pipeline_mode = #tpu.pipeline_mode<synchronous>, transform_indices = @transform_1, window_bounds = array<i64: 256, 512>}, {pipeline_mode = #tpu.pipeline_mode<synchronous>, transform_indices = @transform_2, window_bounds = array<i64: 16, 64>}, {pipeline_mode = #tpu.pipeline_mode<synchronous>, transform_indices = @transform_3, window_bounds = array<i64: 64, 16>}, {transform_indices = @transform_4, window_bounds = array<i64: 2, 1, 32, 256>}]} {
    %c0 = arith.constant 0 : index
    %c0_0 = arith.constant 0 : index
    %c0_1 = arith.constant 0 : index
    %c0_2 = arith.constant 0 : index
    %0 = vector.load %arg1[%c0, %c0_0, %c0_1, %c0_2] : memref<2x1x32x256xf32, #tpu.memory_space<vmem>>, vector<2x1x32x256xf32>
    %1 = vector.shape_cast %0 : vector<2x1x32x256xf32> to vector<64x256xf32>
    %c0_3 = arith.constant 0 : index
    %c0_4 = arith.constant 0 : index
    %2 = vector.load %arg2[%c0_3, %c0_4] : memref<256x512xf32, #tpu.memory_space<vmem>>, vector<256x512xf32>
    %cst = arith.constant dense<0.000000e+00> : vector<64x512xf32>
    %3 = tpu.matmul %1, %2, %cst {dimension_numbers = #tpu.dot_dimension_numbers<[1], [0], [0], [1], [0, 0, 1, 1], [], []>} : vector<64x256xf32>, vector<256x512xf32>, vector<64x512xf32> -> vector<64x512xf32>
    %4 = vector.extract_strided_slice %3 {offsets = [0, 0], sizes = [64, 256], strides = [1, 1]} : vector<64x512xf32> to vector<64x256xf32>
    %5 = vector.extract_strided_slice %3 {offsets = [0, 256], sizes = [64, 256], strides = [1, 1]} : vector<64x512xf32> to vector<64x256xf32>
    %6 = arith.mulf %4, %4 : vector<64x256xf32>
    %7 = arith.mulf %5, %5 : vector<64x256xf32>
    %8 = arith.addf %6, %7 : vector<64x256xf32>
    %9 = math.sqrt %8 : vector<64x256xf32>
    %c0_5 = arith.constant 0 : index
    %c0_6 = arith.constant 0 : index
    %10 = vector.load %arg3[%c0_5, %c0_6] : memref<16x64xf32, #tpu.memory_space<vmem>>, vector<16x64xf32>
    %cst_7 = arith.constant dense<0.000000e+00> : vector<16x256xf32>
    %11 = tpu.matmul %10, %9, %cst_7 {dimension_numbers = #tpu.dot_dimension_numbers<[1], [0], [0], [1], [0, 0, 1, 1], [], []>} : vector<16x64xf32>, vector<64x256xf32>, vector<16x256xf32> -> vector<16x256xf32>
    %cst_8 = arith.constant 0.000000e+00 : f32
    %12 = vector.broadcast %cst_8 : f32 to vector<16x256xf32>
    %13 = arith.maximumf %11, %12 : vector<16x256xf32>
    %c0_9 = arith.constant 0 : index
    %c0_10 = arith.constant 0 : index
    %14 = vector.load %arg4[%c0_9, %c0_10] : memref<64x16xf32, #tpu.memory_space<vmem>>, vector<64x16xf32>
    %cst_11 = arith.constant dense<0.000000e+00> : vector<64x256xf32>
    %15 = tpu.matmul %14, %13, %cst_11 {dimension_numbers = #tpu.dot_dimension_numbers<[1], [0], [0], [1], [0, 0, 1, 1], [], []>} : vector<64x16xf32>, vector<16x256xf32>, vector<64x256xf32> -> vector<64x256xf32>
    %16 = arith.negf %15 : vector<64x256xf32>
    %17 = math.exp %16 : vector<64x256xf32>
    %cst_12 = arith.constant 1.000000e+00 : f32
    %18 = vector.broadcast %cst_12 : f32 to vector<64x256xf32>
    %19 = arith.addf %18, %17 : vector<64x256xf32>
    %20 = arith.divf %18, %19 : vector<64x256xf32>
    %21 = arith.mulf %1, %20 : vector<64x256xf32>
    %22 = vector.shape_cast %21 : vector<64x256xf32> to vector<2x1x32x256xf32>
    %c0_13 = arith.constant 0 : index
    %c0_14 = arith.constant 0 : index
    %c0_15 = arith.constant 0 : index
    %c0_16 = arith.constant 0 : index
    %23 = vector.load %arg5[%c0_13, %c0_14, %c0_15, %c0_16] : memref<2x1x32x256xf32, #tpu.memory_space<vmem>>, vector<2x1x32x256xf32>
    tpu.vector_store %arg5[%c0_13, %c0_14, %c0_15, %c0_16], %22 {strides = array<i32>} : memref<2x1x32x256xf32, #tpu.memory_space<vmem>>, vector<2x1x32x256xf32>,
    return
  }
  func.func @transform_0(%arg0: i32) -> (i32, i32, i32, i32) {
    %c0_i32 = arith.constant 0 : i32
    %c0_i32_0 = arith.constant 0 : i32
    %c0_i32_1 = arith.constant 0 : i32
    %c0_i32_2 = arith.constant 0 : i32
    return %c0_i32, %arg0, %c0_i32_0, %c0_i32_1 : i32, i32, i32, i32
  }
  func.func @transform_1(%arg0: i32) -> (i32, i32) {
    %c0_i32 = arith.constant 0 : i32
    %c0_i32_0 = arith.constant 0 : i32
    %c0_i32_1 = arith.constant 0 : i32
    return %c0_i32, %c0_i32_0 : i32, i32
  }
  func.func @transform_2(%arg0: i32) -> (i32, i32) {
    %c0_i32 = arith.constant 0 : i32
    %c0_i32_0 = arith.constant 0 : i32
    %c0_i32_1 = arith.constant 0 : i32
    return %c0_i32, %c0_i32_0 : i32, i32
  }
  func.func @transform_3(%arg0: i32) -> (i32, i32) {
    %c0_i32 = arith.constant 0 : i32
    %c0_i32_0 = arith.constant 0 : i32
    %c0_i32_1 = arith.constant 0 : i32
    return %c0_i32, %c0_i32_0 : i32, i32
  }
  func.func @transform_4(%arg0: i32) -> (i32, i32, i32, i32) {
    %c0_i32 = arith.constant 0 : i32
    %c0_i32_0 = arith.constant 0 : i32
    %c0_i32_1 = arith.constant 0 : i32
    %c0_i32_2 = arith.constant 0 : i32
    return %c0_i32, %arg0, %c0_i32_0, %c0_i32_1 : i32, i32, i32, i32
  }
}

</mosaic_0001>

<bundles_post_ra>
// kernel: fourier_transform_attention.1
= control target key start
LH: loop header
LB: loop body
LE: loop exit
PB: predicated region body
PF: predicated region fallthrough
CT: control target
= control target key end

     0   :  { %s2701_s1 = inlined_call_operand.vmem [shape: f32[256,512], index: 1, kind: input, shape index: {}]   ;;  %s2702_s0 = inlined_call_operand.vmem [shape: f32[2,1,32,256], index: 0, kind: input, shape index: {}]   ;;  %s2703_s2 = inlined_call_operand.vmem [shape: f32[16,64], index: 2, kind: input, shape index: {}]   ;;  %s2704_s3 = inlined_call_operand.vmem [shape: f32[64,16], index: 3, kind: input, shape index: {}]   ;;  %s2705_s4 = inlined_call_operand.vmem [shape: f32[2,1,32,256], index: 4, kind: output, shape index: {}]  }
   0x1   :  { %v93_v0 = vld [vmem:[%s2701_s1 + $0x1e0] sm:$0xff]  ;;  %v94_v2 = vld [vmem:[%s2701_s1 + $0x1e8] sm:$0xff] }
   0x2   :  { %v157_v1 = vld [vmem:[%s2701_s1 + $0x3e0] sm:$0xff]  ;;  %161 = vmatpush.msra.mxu0 %v93_v0  ;;  %v158_v3 = vld [vmem:[%s2701_s1 + $0x3e8] sm:$0xff]  ;;  %243 = vmatpush.msra.mxu2 %v94_v2  ;;  %v95_v2 = vld [vmem:[%s2701_s1 + $0x1f0] sm:$0xff] }
   0x3   :  { %202 = vmatpush.msra.mxu1 %v157_v1  ;;  %v89_v4 = vld [vmem:[%s2701_s1 + $0x1c0] sm:$0xff]  ;;  %284 = vmatpush.msra.mxu3 %v158_v3  ;;  %v90_v6 = vld [vmem:[%s2701_s1 + $0x1c8] sm:$0xff]  ;;  %v159_v3 = vld [vmem:[%s2701_s1 + $0x3f0] sm:$0xff] }
   0x4   :  { %v153_v5 = vld [vmem:[%s2701_s1 + $0x3c0] sm:$0xff]  ;;  %v154_v7 = vld [vmem:[%s2701_s1 + $0x3c8] sm:$0xff]  ;;  %162 = vmatpush.msra.mxu0 %v89_v4  ;;  %244 = vmatpush.msra.mxu2 %v90_v6  ;;  %v1663_v4 = vld [vmem:[%s2701_s1 + $0x1f8] sm:$0xff] }
   0x5   :  { %v85_v8 = vld [vmem:[%s2701_s1 + $0x1a0] sm:$0xff]  ;;  %203 = vmatpush.msra.mxu1 %v153_v5  ;;  %v86_v10 = vld [vmem:[%s2701_s1 + $0x1a8] sm:$0xff]  ;;  %285 = vmatpush.msra.mxu3 %v154_v7  ;;  %v1668_v5 = vld [vmem:[%s2701_s1 + $0x3f8] sm:$0xff] }
   0x6   :  { %v149_v9 = vld [vmem:[%s2701_s1 + $0x3a0] sm:$0xff]  ;;  %v150_v11 = vld [vmem:[%s2701_s1 + $0x3a8] sm:$0xff]  ;;  %163 = vmatpush.msra.mxu0 %v85_v8  ;;  %245 = vmatpush.msra.mxu2 %v86_v10  ;;  %v91_v6 = vld [vmem:[%s2701_s1 + $0x1d0] sm:$0xff] }
   0x7   :  { %v81_v12 = vld [vmem:[%s2701_s1 + $0x180] sm:$0xff]  ;;  %204 = vmatpush.msra.mxu1 %v149_v9  ;;  %v82_v14 = vld [vmem:[%s2701_s1 + $0x188] sm:$0xff]  ;;  %286 = vmatpush.msra.mxu3 %v150_v11  ;;  %v155_v7 = vld [vmem:[%s2701_s1 + $0x3d0] sm:$0xff] }
   0x8   :  { %v145_v13 = vld [vmem:[%s2701_s1 + $0x380] sm:$0xff]  ;;  %v146_v15 = vld [vmem:[%s2701_s1 + $0x388] sm:$0xff]  ;;  %164 = vmatpush.msra.mxu0 %v81_v12  ;;  %246 = vmatpush.msra.mxu2 %v82_v14  ;;  %v1681_v8 = vld [vmem:[%s2701_s1 + $0x1d8] sm:$0xff] }
   0x9   :  { %v77_v16 = vld [vmem:[%s2701_s1 + $0x160] sm:$0xff]  ;;  %205 = vmatpush.msra.mxu1 %v145_v13  ;;  %v78_v18 = vld [vmem:[%s2701_s1 + $0x168] sm:$0xff]  ;;  %287 = vmatpush.msra.mxu3 %v146_v15  ;;  %v1686_v9 = vld [vmem:[%s2701_s1 + $0x3d8] sm:$0xff] }
   0xa   :  { %v141_v17 = vld [vmem:[%s2701_s1 + $0x360] sm:$0xff]  ;;  %v142_v19 = vld [vmem:[%s2701_s1 + $0x368] sm:$0xff]  ;;  %165 = vmatpush.msra.mxu0 %v77_v16  ;;  %247 = vmatpush.msra.mxu2 %v78_v18  ;;  %v87_v10 = vld [vmem:[%s2701_s1 + $0x1b0] sm:$0xff] }
   0xb   :  { %v73_v20 = vld [vmem:[%s2701_s1 + $0x140] sm:$0xff]  ;;  %206 = vmatpush.msra.mxu1 %v141_v17  ;;  %v74_v22 = vld [vmem:[%s2701_s1 + $0x148] sm:$0xff]  ;;  %288 = vmatpush.msra.mxu3 %v142_v19  ;;  %v151_v11 = vld [vmem:[%s2701_s1 + $0x3b0] sm:$0xff] }
   0xc   :  { %v137_v21 = vld [vmem:[%s2701_s1 + $0x340] sm:$0xff]  ;;  %v138_v23 = vld [vmem:[%s2701_s1 + $0x348] sm:$0xff]  ;;  %166 = vmatpush.msra.mxu0 %v73_v20  ;;  %248 = vmatpush.msra.mxu2 %v74_v22  ;;  %v1697_v12 = vld [vmem:[%s2701_s1 + $0x1b8] sm:$0xff] }
   0xd   :  { %v69_v24 = vld [vmem:[%s2701_s1 + $0x120] sm:$0xff]  ;;  %207 = vmatpush.msra.mxu1 %v137_v21  ;;  %v70_v26 = vld [vmem:[%s2701_s1 + $0x128] sm:$0xff]  ;;  %289 = vmatpush.msra.mxu3 %v138_v23  ;;  %v1702_v13 = vld [vmem:[%s2701_s1 + $0x3b8] sm:$0xff] }
   0xe   :  { %v133_v25 = vld [vmem:[%s2701_s1 + $0x320] sm:$0xff]  ;;  %v134_v27 = vld [vmem:[%s2701_s1 + $0x328] sm:$0xff]  ;;  %167 = vmatpush.msra.mxu0 %v69_v24  ;;  %249 = vmatpush.msra.mxu2 %v70_v26  ;;  %v1707_v14 = vld [vmem:[%s2702_s0 + $0x10] sm:$0xff] }
   0xf   :  { %v65_v28 = vld [vmem:[%s2701_s1 + $0x100] sm:$0xff]  ;;  %208 = vmatpush.msra.mxu1 %v133_v25  ;;  %v66_v30 = vld [vmem:[%s2701_s1 + $0x108] sm:$0xff]  ;;  %290 = vmatpush.msra.mxu3 %v134_v27  ;;  %v1712_v15 = vld [vmem:[%s2702_s0 + $0x18] sm:$0xff] }
  0x10   :  { %v129_v29 = vld [vmem:[%s2701_s1 + $0x300] sm:$0xff]  ;;  %v130_v31 = vld [vmem:[%s2701_s1 + $0x308] sm:$0xff]  ;;  %168 = vmatpush.msra.mxu0 %v65_v28  ;;  %250 = vmatpush.msra.mxu2 %v66_v30  ;;  %v83_v16 = vld [vmem:[%s2701_s1 + $0x190] sm:$0xff] }
  0x11   :  { %v61_v32 = vld [vmem:[%s2701_s1 + $0xe0] sm:$0xff]  ;;  %209 = vmatpush.msra.mxu1 %v129_v29  ;;  %v62_v34 = vld [vmem:[%s2701_s1 + $0xe8] sm:$0xff]  ;;  %291 = vmatpush.msra.mxu3 %v130_v31  ;;  %v147_v17 = vld [vmem:[%s2701_s1 + $0x390] sm:$0xff] }
  0x12   :  { %v125_v33 = vld [vmem:[%s2701_s1 + $0x2e0] sm:$0xff]  ;;  %v126_v35 = vld [vmem:[%s2701_s1 + $0x2e8] sm:$0xff]  ;;  %169 = vmatpush.msra.mxu0 %v61_v32  ;;  %251 = vmatpush.msra.mxu2 %v62_v34  ;;  %v1729_v18 = vld [vmem:[%s2701_s1 + $0x198] sm:$0xff] }
  0x13   :  { %v57_v36 = vld [vmem:[%s2701_s1 + $0xc0] sm:$0xff]  ;;  %210 = vmatpush.msra.mxu1 %v125_v33  ;;  %v58_v38 = vld [vmem:[%s2701_s1 + $0xc8] sm:$0xff]  ;;  %292 = vmatpush.msra.mxu3 %v126_v35  ;;  %v1734_v19 = vld [vmem:[%s2701_s1 + $0x398] sm:$0xff] }
  0x14   :  { %v121_v37 = vld [vmem:[%s2701_s1 + $0x2c0] sm:$0xff]  ;;  %v122_v39 = vld [vmem:[%s2701_s1 + $0x2c8] sm:$0xff]  ;;  %170 = vmatpush.msra.mxu0 %v57_v36  ;;  %252 = vmatpush.msra.mxu2 %v58_v38  ;;  %v79_v20 = vld [vmem:[%s2701_s1 + $0x170] sm:$0xff] }
  0x15   :  { %v53_v40 = vld [vmem:[%s2701_s1 + $0xa0] sm:$0xff]  ;;  %211 = vmatpush.msra.mxu1 %v121_v37  ;;  %v54_v42 = vld [vmem:[%s2701_s1 + $0xa8] sm:$0xff]  ;;  %293 = vmatpush.msra.mxu3 %v122_v39  ;;  %v143_v21 = vld [vmem:[%s2701_s1 + $0x370] sm:$0xff] }
  0x16   :  { %v117_v41 = vld [vmem:[%s2701_s1 + $0x2a0] sm:$0xff]  ;;  %v118_v43 = vld [vmem:[%s2701_s1 + $0x2a8] sm:$0xff]  ;;  %171 = vmatpush.msra.mxu0 %v53_v40  ;;  %253 = vmatpush.msra.mxu2 %v54_v42  ;;  %v1747_v22 = vld [vmem:[%s2701_s1 + $0x178] sm:$0xff] }
  0x17   :  { %v49_v44 = vld [vmem:[%s2701_s1 + $0x80] sm:$0xff]  ;;  %212 = vmatpush.msra.mxu1 %v117_v41  ;;  %v50_v46 = vld [vmem:[%s2701_s1 + $0x88] sm:$0xff]  ;;  %294 = vmatpush.msra.mxu3 %v118_v43  ;;  %v1752_v23 = vld [vmem:[%s2701_s1 + $0x378] sm:$0xff] }
  0x18   :  { %v113_v45 = vld [vmem:[%s2701_s1 + $0x280] sm:$0xff]  ;;  %v114_v47 = vld [vmem:[%s2701_s1 + $0x288] sm:$0xff]  ;;  %172 = vmatpush.msra.mxu0 %v49_v44  ;;  %254 = vmatpush.msra.mxu2 %v50_v46  ;;  %v75_v24 = vld [vmem:[%s2701_s1 + $0x150] sm:$0xff] }
  0x19   :  { %v45_v48 = vld [vmem:[%s2701_s1 + $0x60] sm:$0xff]  ;;  %213 = vmatpush.msra.mxu1 %v113_v45  ;;  %v46_v50 = vld [vmem:[%s2701_s1 + $0x68] sm:$0xff]  ;;  %295 = vmatpush.msra.mxu3 %v114_v47  ;;  %v139_v25 = vld [vmem:[%s2701_s1 + $0x350] sm:$0xff] }
  0x1a   :  { %v109_v49 = vld [vmem:[%s2701_s1 + $0x260] sm:$0xff]  ;;  %v110_v51 = vld [vmem:[%s2701_s1 + $0x268] sm:$0xff]  ;;  %173 = vmatpush.msra.mxu0 %v45_v48  ;;  %255 = vmatpush.msra.mxu2 %v46_v50  ;;  %v1765_v26 = vld [vmem:[%s2701_s1 + $0x158] sm:$0xff] }
  0x1b   :  { %v41_v52 = vld [vmem:[%s2701_s1 + $0x40] sm:$0xff]  ;;  %214 = vmatpush.msra.mxu1 %v109_v49  ;;  %v42_v54 = vld [vmem:[%s2701_s1 + $0x48] sm:$0xff]  ;;  %296 = vmatpush.msra.mxu3 %v110_v51  ;;  %v1770_v27 = vld [vmem:[%s2701_s1 + $0x358] sm:$0xff] }
  0x1c   :  { %v105_v53 = vld [vmem:[%s2701_s1 + $0x240] sm:$0xff]  ;;  %v106_v55 = vld [vmem:[%s2701_s1 + $0x248] sm:$0xff]  ;;  %174 = vmatpush.msra.mxu0 %v41_v52  ;;  %256 = vmatpush.msra.mxu2 %v42_v54  ;;  %v71_v30 = vld [vmem:[%s2701_s1 + $0x130] sm:$0xff] }
  0x1d   :  { %v37_v56 = vld [vmem:[%s2701_s1 + $0x20] sm:$0xff]  ;;  %215 = vmatpush.msra.mxu1 %v105_v53  ;;  %v38_v58 = vld [vmem:[%s2701_s1 + $0x28] sm:$0xff]  ;;  %297 = vmatpush.msra.mxu3 %v106_v55  ;;  %v135_v31 = vld [vmem:[%s2701_s1 + $0x330] sm:$0xff] }
  0x1e   :  { %v101_v57 = vld [vmem:[%s2701_s1 + $0x220] sm:$0xff]  ;;  %v102_v59 = vld [vmem:[%s2701_s1 + $0x228] sm:$0xff]  ;;  %175 = vmatpush.msra.mxu0 %v37_v56  ;;  %257 = vmatpush.msra.mxu2 %v38_v58  ;;  %v1797_v32 = vld [vmem:[%s2701_s1 + $0x138] sm:$0xff] }
  0x1f   :  { %v33_v60 = vld [vmem:[%s2701_s1] sm:$0xff]  ;;  %216 = vmatpush.msra.mxu1 %v101_v57  ;;  %v34_v62 = vld [vmem:[%s2701_s1 + $0x8] sm:$0xff]  ;;  %298 = vmatpush.msra.mxu3 %v102_v59  ;;  %v1802_v33 = vld [vmem:[%s2701_s1 + $0x338] sm:$0xff] }
  0x20   :  { %v97_v61 = vld [vmem:[%s2701_s1 + $0x200] sm:$0xff]  ;;  %v98_v63 = vld [vmem:[%s2701_s1 + $0x208] sm:$0xff]  ;;  %176 = vmatpush.msra.mxu0 %v33_v60  ;;  %258 = vmatpush.msra.mxu2 %v34_v62  ;;  %v67_v34 = vld [vmem:[%s2701_s1 + $0x110] sm:$0xff] }
  0x21   :  { %v1643_v0 = vld [vmem:[%s2702_s0] sm:$0xff]  ;;  %v1648_v1 = vld [vmem:[%s2702_s0 + $0x8] sm:$0xff]  ;;  %217 = vmatpush.msra.mxu1 %v97_v61  ;;  %299 = vmatpush.msra.mxu3 %v98_v63  ;;  %v131_v35 = vld [vmem:[%s2701_s1 + $0x310] sm:$0xff] }
  0x22   :  { %177 = vmatmul.f32.vlgmr.msra.gmra.mxu0 %v1643_v0  ;;  %218 = vmatmul.f32.vlgmr.msra.gmra.mxu1 %v1648_v1  ;;  %v1775_v28 = vld [vmem:[%s2702_s0 + $0x20] sm:$0xff]  ;;  %v1780_v29 = vld [vmem:[%s2702_s0 + $0x28] sm:$0xff]  ;;  %v1815_v36 = vld [vmem:[%s2701_s1 + $0x118] sm:$0xff] }
  0x23   :  { %259 = vmatmul.f32.vlgmr.msra.gmra.mxu2 %v1643_v0  ;;  %300 = vmatmul.f32.vlgmr.msra.gmra.mxu3 %v1648_v1  ;;  %v1820_v37 = vld [vmem:[%s2701_s1 + $0x318] sm:$0xff]  ;;  %v63_v38 = vld [vmem:[%s2701_s1 + $0xf0] sm:$0xff]  ;;  %v1911_v56 = vld [vmem:[%s2702_s0 + $0x40] sm:$0xff] }
  0x24   :  { %325 = vmatpush.msrb.mxu0 %v95_v2  ;;  %366 = vmatpush.msrb.mxu1 %v159_v3  ;;  %v127_v39 = vld [vmem:[%s2701_s1 + $0x2f0] sm:$0xff]  ;;  %v1833_v40 = vld [vmem:[%s2701_s1 + $0xf8] sm:$0xff]  ;;  %v1916_v57 = vld [vmem:[%s2702_s0 + $0x48] sm:$0xff] }
  0x25   :  { %1279 = vmatpush.msrb.mxu2 %v1663_v4  ;;  %1295 = vmatpush.msrb.mxu3 %v1668_v5  ;;  %v1838_v41 = vld [vmem:[%s2701_s1 + $0x2f8] sm:$0xff]  ;;  %v1843_v42 = vld [vmem:[%s2702_s0 + $0x30] sm:$0xff] }
  0x26   :  { %326 = vmatpush.msrb.mxu0 %v91_v6  ;;  %367 = vmatpush.msrb.mxu1 %v155_v7  ;;  %v1848_v43 = vld [vmem:[%s2702_s0 + $0x38] sm:$0xff]  ;;  %v59_v44 = vld [vmem:[%s2701_s1 + $0xd0] sm:$0xff] }
  0x27   :  { %1280 = vmatpush.msrb.mxu2 %v1681_v8  ;;  %1296 = vmatpush.msrb.mxu3 %v1686_v9  ;;  %v123_v45 = vld [vmem:[%s2701_s1 + $0x2d0] sm:$0xff]  ;;  %v1865_v46 = vld [vmem:[%s2701_s1 + $0xd8] sm:$0xff] }
  0x28   :  { %327 = vmatpush.msrb.mxu0 %v87_v10  ;;  %368 = vmatpush.msrb.mxu1 %v151_v11  ;;  %v1870_v47 = vld [vmem:[%s2701_s1 + $0x2d8] sm:$0xff]  ;;  %v55_v48 = vld [vmem:[%s2701_s1 + $0xb0] sm:$0xff] }
  0x29   :  { %1281 = vmatpush.msrb.mxu2 %v1697_v12  ;;  %1297 = vmatpush.msrb.mxu3 %v1702_v13  ;;  %v119_v49 = vld [vmem:[%s2701_s1 + $0x2b0] sm:$0xff]  ;;  %v1883_v50 = vld [vmem:[%s2701_s1 + $0xb8] sm:$0xff] }
  0x2a   :  { %180 = vmatmul.f32.gmra.mxu0 %v1707_v14  ;;  %221 = vmatmul.f32.gmra.mxu1 %v1712_v15  ;;  %v1888_v51 = vld [vmem:[%s2701_s1 + $0x2b8] sm:$0xff]  ;;  %v51_v52 = vld [vmem:[%s2701_s1 + $0x90] sm:$0xff] }
  0x2b   :  { %262 = vmatmul.f32.gmra.mxu2 %v1707_v14  ;;  %303 = vmatmul.f32.gmra.mxu3 %v1712_v15  ;;  %v115_v53 = vld [vmem:[%s2701_s1 + $0x290] sm:$0xff]  ;;  %v1901_v54 = vld [vmem:[%s2701_s1 + $0x98] sm:$0xff] }
  0x2c   :  { %328 = vmatpush.msrb.mxu0 %v83_v16  ;;  %369 = vmatpush.msrb.mxu1 %v147_v17  ;;  %v1906_v55 = vld [vmem:[%s2701_s1 + $0x298] sm:$0xff]  ;;  %v47_v58 = vld [vmem:[%s2701_s1 + $0x70] sm:$0xff] }
  0x2d   :  { %1282 = vmatpush.msrb.mxu2 %v1729_v18  ;;  %1298 = vmatpush.msrb.mxu3 %v1734_v19  ;;  %v111_v59 = vld [vmem:[%s2701_s1 + $0x270] sm:$0xff]  ;;  %v1933_v60 = vld [vmem:[%s2701_s1 + $0x78] sm:$0xff] }
  0x2e   :  { %329 = vmatpush.msrb.mxu0 %v79_v20  ;;  %370 = vmatpush.msrb.mxu1 %v143_v21  ;;  %v1938_v61 = vld [vmem:[%s2701_s1 + $0x278] sm:$0xff]  ;;  %v43_v62 = vld [vmem:[%s2701_s1 + $0x50] sm:$0xff] }
  0x2f   :  { %1283 = vmatpush.msrb.mxu2 %v1747_v22  ;;  %1299 = vmatpush.msrb.mxu3 %v1752_v23  ;;  %v107_v63 = vld [vmem:[%s2701_s1 + $0x250] sm:$0xff]  ;;  %v1951_v2 = vld [vmem:[%s2701_s1 + $0x58] sm:$0xff] }
  0x30   :  { %330 = vmatpush.msrb.mxu0 %v75_v24  ;;  %371 = vmatpush.msrb.mxu1 %v139_v25  ;;  %v1956_v3 = vld [vmem:[%s2701_s1 + $0x258] sm:$0xff]  ;;  %v39_v6 = vld [vmem:[%s2701_s1 + $0x30] sm:$0xff] }
  0x31   :  { %1284 = vmatpush.msrb.mxu2 %v1765_v26  ;;  %1300 = vmatpush.msrb.mxu3 %v1770_v27  ;;  %v103_v7 = vld [vmem:[%s2701_s1 + $0x230] sm:$0xff]  ;;  %v1969_v10 = vld [vmem:[%s2701_s1 + $0x38] sm:$0xff] }
  0x32   :  { %183 = vmatmul.f32.gmra.mxu0 %v1775_v28  ;;  %224 = vmatmul.f32.gmra.mxu1 %v1780_v29  ;;  %v1974_v11 = vld [vmem:[%s2701_s1 + $0x238] sm:$0xff]  ;;  %v1979_v16 = vld [vmem:[%s2702_s0 + $0x50] sm:$0xff] }
  0x33   :  { %265 = vmatmul.f32.gmra.mxu2 %v1775_v28  ;;  %306 = vmatmul.f32.gmra.mxu3 %v1780_v29  ;;  %v1984_v17 = vld [vmem:[%s2702_s0 + $0x58] sm:$0xff]  ;;  %v35_v20 = vld [vmem:[%s2701_s1 + $0x10] sm:$0xff] }
  0x34   :  { %331 = vmatpush.msrb.mxu0 %v71_v30  ;;  %372 = vmatpush.msrb.mxu1 %v135_v31  ;;  %v99_v21 = vld [vmem:[%s2701_s1 + $0x210] sm:$0xff]  ;;  %v36_v24 = vld [vmem:[%s2701_s1 + $0x18] sm:$0xff]  ;;  %v2011_v30 = vld [vmem:[%s2702_s0 + $0x60] sm:$0xff] }
  0x35   :  { %1285 = vmatpush.msrb.mxu2 %v1797_v32  ;;  %1301 = vmatpush.msrb.mxu3 %v1802_v33  ;;  %v100_v25 = vld [vmem:[%s2701_s1 + $0x218] sm:$0xff]  ;;  %v2016_v31 = vld [vmem:[%s2702_s0 + $0x68] sm:$0xff] }
  0x36   :  { %332 = vmatpush.msrb.mxu0 %v67_v34  ;;  %373 = vmatpush.msrb.mxu1 %v131_v35 }
  0x37   :  { %1286 = vmatpush.msrb.mxu2 %v1815_v36  ;;  %1302 = vmatpush.msrb.mxu3 %v1820_v37 }
  0x38   :  { %333 = vmatpush.msrb.mxu0 %v63_v38  ;;  %374 = vmatpush.msrb.mxu1 %v127_v39 }
  0x39   :  { %1287 = vmatpush.msrb.mxu2 %v1833_v40  ;;  %1303 = vmatpush.msrb.mxu3 %v1838_v41 }
  0x3a   :  { %186 = vmatmul.f32.gmra.mxu0 %v1843_v42  ;;  %227 = vmatmul.f32.gmra.mxu1 %v1848_v43 }
  0x3b   :  { %268 = vmatmul.f32.gmra.mxu2 %v1843_v42  ;;  %309 = vmatmul.f32.gmra.mxu3 %v1848_v43 }
  0x3c   :  { %334 = vmatpush.msrb.mxu0 %v59_v44  ;;  %375 = vmatpush.msrb.mxu1 %v123_v45 }
  0x3d   :  { %1288 = vmatpush.msrb.mxu2 %v1865_v46  ;;  %1304 = vmatpush.msrb.mxu3 %v1870_v47 }
  0x3e   :  { %335 = vmatpush.msrb.mxu0 %v55_v48  ;;  %376 = vmatpush.msrb.mxu1 %v119_v49 }
  0x3f   :  { %1289 = vmatpush.msrb.mxu2 %v1883_v50  ;;  %1305 = vmatpush.msrb.mxu3 %v1888_v51 }
  0x40   :  { %336 = vmatpush.msrb.mxu0 %v51_v52  ;;  %377 = vmatpush.msrb.mxu1 %v115_v53 }
  0x41   :  { %1290 = vmatpush.msrb.mxu2 %v1901_v54  ;;  %1306 = vmatpush.msrb.mxu3 %v1906_v55 }
  0x42   :  { %189 = vmatmul.f32.gmra.mxu0 %v1911_v56  ;;  %230 = vmatmul.f32.gmra.mxu1 %v1916_v57 }
  0x43   :  { %271 = vmatmul.f32.gmra.mxu2 %v1911_v56  ;;  %312 = vmatmul.f32.gmra.mxu3 %v1916_v57 }
  0x44   :  { %337 = vmatpush.msrb.mxu0 %v47_v58  ;;  %378 = vmatpush.msrb.mxu1 %v111_v59 }
  0x45   :  { %1291 = vmatpush.msrb.mxu2 %v1933_v60  ;;  %1307 = vmatpush.msrb.mxu3 %v1938_v61 }
  0x46   :  { %338 = vmatpush.msrb.mxu0 %v43_v62  ;;  %379 = vmatpush.msrb.mxu1 %v107_v63 }
  0x47   :  { %1292 = vmatpush.msrb.mxu2 %v1951_v2  ;;  %1308 = vmatpush.msrb.mxu3 %v1956_v3 }
  0x48   :  { %339 = vmatpush.msrb.mxu0 %v39_v6  ;;  %380 = vmatpush.msrb.mxu1 %v103_v7 }
  0x49   :  { %1293 = vmatpush.msrb.mxu2 %v1969_v10  ;;  %1309 = vmatpush.msrb.mxu3 %v1974_v11 }
  0x4a   :  { %192 = vmatmul.f32.gmra.mxu0 %v1979_v16  ;;  %233 = vmatmul.f32.gmra.mxu1 %v1984_v17 }
  0x4b   :  { %274 = vmatmul.f32.gmra.mxu2 %v1979_v16  ;;  %315 = vmatmul.f32.gmra.mxu3 %v1984_v17 }
  0x4c   :  { %340 = vmatpush.msrb.mxu0 %v35_v20  ;;  %381 = vmatpush.msrb.mxu1 %v99_v21 }
  0x4d   :  { %1294 = vmatpush.msrb.mxu2 %v36_v24  ;;  %1310 = vmatpush.msrb.mxu3 %v100_v25 }
  0x4e   :  { %407 = vmatpush.msra.mxu0 %v1663_v4  ;;  %448 = vmatpush.msra.mxu1 %v1668_v5  ;;  %v31_v4 = vld [vmem:[%s2702_s0 + $0x70] sm:$0xff]  ;;  %v32_v5 = vld [vmem:[%s2702_s0 + $0x78] sm:$0xff] }
  0x50   :  { %408 = vmatpush.msra.mxu0 %v1681_v8  ;;  %449 = vmatpush.msra.mxu1 %v1686_v9 }
  0x52   :  { %195 = vmatmul.f32.gmra.mxu0 %v2011_v30  ;;  %236 = vmatmul.f32.gmra.mxu1 %v2016_v31 }
  0x53   :  { %277 = vmatmul.f32.gmra.mxu2 %v2011_v30  ;;  %318 = vmatmul.f32.gmra.mxu3 %v2016_v31 }
  0x54   :  { %409 = vmatpush.msra.mxu0 %v1697_v12  ;;  %450 = vmatpush.msra.mxu1 %v1702_v13 }
  0x56   :  { %410 = vmatpush.msra.mxu0 %v1729_v18  ;;  %451 = vmatpush.msra.mxu1 %v1734_v19 }
  0x58   :  { %411 = vmatpush.msra.mxu0 %v1747_v22  ;;  %452 = vmatpush.msra.mxu1 %v1752_v23 }
  0x5a   :  { %198 = vmatmul.f32.gmra.mxu0 %v31_v4  ;;  %239 = vmatmul.f32.gmra.mxu1 %v32_v5 }
  0x5b   :  { %280 = vmatmul.f32.gmra.mxu2 %v31_v4  ;;  %321 = vmatmul.f32.gmra.mxu3 %v32_v5 }
  0x5c   :  { %412 = vmatpush.msra.mxu0 %v1765_v26  ;;  %453 = vmatpush.msra.mxu1 %v1770_v27 }
  0x5e   :  { %413 = vmatpush.msra.mxu0 %v1797_v32  ;;  %454 = vmatpush.msra.mxu1 %v1802_v33 }
  0x60   :  { %414 = vmatpush.msra.mxu0 %v1815_v36  ;;  %455 = vmatpush.msra.mxu1 %v1820_v37 }
  0x62   :  { %341 = vmatmul.f32.vlgmr.msrb.gmra.mxu0 %v1643_v0  ;;  %382 = vmatmul.f32.vlgmr.msrb.gmra.mxu1 %v1648_v1 }
  0x63   :  { %432 = vmatmul.f32.vlgmr.msrb.gmra.mxu2 %v1843_v42  ;;  %473 = vmatmul.f32.vlgmr.msrb.gmra.mxu3 %v1848_v43 }
  0x64   :  { %415 = vmatpush.msra.mxu0 %v1833_v40  ;;  %456 = vmatpush.msra.mxu1 %v1838_v41 }
  0x66   :  { %416 = vmatpush.msra.mxu0 %v1865_v46  ;;  %457 = vmatpush.msra.mxu1 %v1870_v47 }
  0x68   :  { %417 = vmatpush.msra.mxu0 %v1883_v50  ;;  %458 = vmatpush.msra.mxu1 %v1888_v51 }
  0x6a   :  { %344 = vmatmul.f32.gmra.mxu0 %v1707_v14  ;;  %385 = vmatmul.f32.gmra.mxu1 %v1712_v15 }
  0x6b   :  { %435 = vmatmul.f32.gmra.mxu2 %v1911_v56  ;;  %476 = vmatmul.f32.gmra.mxu3 %v1916_v57 }
  0x6c   :  { %418 = vmatpush.msra.mxu0 %v1901_v54  ;;  %459 = vmatpush.msra.mxu1 %v1906_v55 }
  0x6e   :  { %419 = vmatpush.msra.mxu0 %v1933_v60  ;;  %460 = vmatpush.msra.mxu1 %v1938_v61 }
  0x70   :  { %420 = vmatpush.msra.mxu0 %v1951_v2  ;;  %461 = vmatpush.msra.mxu1 %v1956_v3 }
  0x72   :  { %347 = vmatmul.f32.gmra.mxu0 %v1775_v28  ;;  %388 = vmatmul.f32.gmra.mxu1 %v1780_v29 }
  0x73   :  { %438 = vmatmul.f32.gmra.mxu2 %v1979_v16  ;;  %479 = vmatmul.f32.gmra.mxu3 %v1984_v17 }
  0x74   :  { %421 = vmatpush.msra.mxu0 %v1969_v10  ;;  %462 = vmatpush.msra.mxu1 %v1974_v11 }
  0x76   :  { %422 = vmatpush.msra.mxu0 %v36_v24  ;;  %463 = vmatpush.msra.mxu1 %v100_v25 }
  0x7a   :  { %350 = vmatmul.f32.gmra.mxu0 %v1843_v42  ;;  %391 = vmatmul.f32.gmra.mxu1 %v1848_v43 }
  0x7b   :  { %441 = vmatmul.f32.gmra.mxu2 %v2011_v30  ;;  %482 = vmatmul.f32.gmra.mxu3 %v2016_v31 }
  0x82   :  { %353 = vmatmul.f32.gmra.mxu0 %v1911_v56  ;;  %394 = vmatmul.f32.gmra.mxu1 %v1916_v57 }
  0x83   :  { %444 = vmatmul.f32.gmra.mxu2 %v31_v4  ;;  %485 = vmatmul.f32.gmra.mxu3 %v32_v5 }
  0x8a   :  { %356 = vmatmul.f32.gmra.mxu0 %v1979_v16  ;;  %397 = vmatmul.f32.gmra.mxu1 %v1984_v17 }
  0x92   :  { %359 = vmatmul.f32.gmra.mxu0 %v2011_v30  ;;  %400 = vmatmul.f32.gmra.mxu1 %v2016_v31 }
  0x9a   :  { %362 = vmatmul.f32.gmra.mxu0 %v31_v4  ;;  %403 = vmatmul.f32.gmra.mxu1 %v32_v5 }
  0x9f   :  { %v178_v8 = vpop.f32.mrf.mxu0  ;;  %v219_v9 = vpop.f32.mrf.mxu1 }
  0xa0   :  { %v220_v12 = vadd.f32 %v219_v9, %v178_v8 }
  0xa2   :  { %423 = vmatmul.f32.vlgmr.msra.gmra.mxu0 %v1643_v0  ;;  %464 = vmatmul.f32.vlgmr.msra.gmra.mxu1 %v1648_v1  ;;  %v489_v2 = vmul.f32 %v220_v12, %v220_v12 }
  0xa6   :  { %v260_v13 = vpop.f32.mrf.mxu2  ;;  %v301_v18 = vpop.f32.mrf.mxu3 }
  0xa7   :  { %v2080_v19 = vadd.f32 %v301_v18, %v260_v13  ;;  %v181_v22 = vpop.f32.mrf.mxu0  ;;  %v222_v23 = vpop.f32.mrf.mxu1 }
  0xa8   :  { %v2082_v26 = vadd.f32 %v222_v23, %v181_v22 }
  0xaa   :  { %426 = vmatmul.f32.gmra.mxu0 %v1707_v14  ;;  %467 = vmatmul.f32.gmra.mxu1 %v1712_v15 }
  0xae   :  { %v263_v27 = vpop.f32.mrf.mxu2  ;;  %v304_v32 = vpop.f32.mrf.mxu3 }
  0xaf   :  { %v2086_v33 = vadd.f32 %v304_v32, %v263_v27  ;;  %v184_v34 = vpop.f32.mrf.mxu0  ;;  %v225_v0 = vpop.f32.mrf.mxu1 }
  0xb0   :  { %v2088_v35 = vadd.f32 %v225_v0, %v184_v34 }
  0xb2   :  { %429 = vmatmul.f32.gmra.mxu0 %v1775_v28  ;;  %470 = vmatmul.f32.gmra.mxu1 %v1780_v29 }
  0xb6   :  { %v266_v1 = vpop.f32.mrf.mxu2  ;;  %v307_v36 = vpop.f32.mrf.mxu3 }
  0xb7   :  { %v2092_v37 = vadd.f32 %v307_v36, %v266_v1  ;;  %v187_v38 = vpop.f32.mrf.mxu0  ;;  %v228_v14 = vpop.f32.mrf.mxu1 }
  0xb8   :  { %v2094_v39 = vadd.f32 %v228_v14, %v187_v38 }
  0xbe   :  { %v269_v15 = vpop.f32.mrf.mxu2  ;;  %v310_v40 = vpop.f32.mrf.mxu3 }
  0xbf   :  { %v311_v41 = vadd.f32 %v310_v40, %v269_v15  ;;  %v190_v42 = vpop.f32.mrf.mxu0  ;;  %v231_v43 = vpop.f32.mrf.mxu1 }
  0xc0   :  { %v2096_v44 = vadd.f32 %v231_v43, %v190_v42 }
  0xc1   :  { %v496_v18 = vmul.f32 %v311_v41, %v311_v41 }
  0xc6   :  { %v272_v45 = vpop.f32.mrf.mxu2  ;;  %v313_v46 = vpop.f32.mrf.mxu3 }
  0xc7   :  { %v314_v28 = vadd.f32 %v313_v46, %v272_v45  ;;  %v193_v47 = vpop.f32.mrf.mxu0  ;;  %v234_v29 = vpop.f32.mrf.mxu1 }
  0xc8   :  { %v2098_v48 = vadd.f32 %v234_v29, %v193_v47 }
  0xc9   :  { %v498_v27 = vmul.f32 %v314_v28, %v314_v28 }
  0xce   :  { %v275_v49 = vpop.f32.mrf.mxu2  ;;  %v316_v50 = vpop.f32.mrf.mxu3 }
  0xcf   :  { %v196_v51 = vpop.f32.mrf.mxu0  ;;  %v237_v52 = vpop.f32.mrf.mxu1  ;;  %v317_v8 = vadd.f32 %v316_v50, %v275_v49 }
  0xd0   :  { %v2100_v53 = vadd.f32 %v237_v52, %v196_v51 }
  0xd1   :  { %v500_v34 = vmul.f32 %v317_v8, %v317_v8 }
  0xd6   :  { %v278_v54 = vpop.f32.mrf.mxu2  ;;  %v319_v55 = vpop.f32.mrf.mxu3 }
  0xd7   :  { %v199_v56 = vpop.f32.mrf.mxu0  ;;  %v240_v57 = vpop.f32.mrf.mxu1  ;;  %v320_v1 = vadd.f32 %v319_v55, %v278_v54 }
  0xd8   :  { %v2102_v58 = vadd.f32 %v240_v57, %v199_v56 }
  0xd9   :  { %v502_v41 = vmul.f32 %v320_v1, %v320_v1 }
  0xde   :  { %v281_v59 = vpop.f32.mrf.mxu2  ;;  %v322_v60 = vpop.f32.mrf.mxu3 }
  0xdf   :  { %v342_v61 = vpop.f32.mrf.mxu0  ;;  %v383_v62 = vpop.f32.mrf.mxu1  ;;  %v323_v47 = vadd.f32 %v322_v60, %v281_v59 }
  0xe0   :  { %v384_v63 = vadd.f32 %v383_v62, %v342_v61  ;;  %v491_v62 = vmul.f32 %v2082_v26, %v2082_v26 }
  0xe1   :  { %v504_v59 = vmul.f32 %v323_v47, %v323_v47 }
  0xe2   :  { %v505_v3 = vmul.f32 %v384_v63, %v384_v63 }
  0xe4   :  { %v2104_v6 = vadd.f32 %v505_v3, %v489_v2 }
  0xe6   :  { %v433_v7 = vpop.f32.mrf.mxu2  ;;  %v474_v10 = vpop.f32.mrf.mxu3 }
  0xe7   :  { %v345_v11 = vpop.f32.mrf.mxu0  ;;  %v386_v16 = vpop.f32.mrf.mxu1  ;;  %v475_v25 = vadd.f32 %v474_v10, %v433_v7 }
  0xe8   :  { %v387_v45 = vadd.f32 %v386_v16, %v345_v11 }
  0xe9   :  { %v512_v31 = vmul.f32 %v475_v25, %v475_v25  ;;  %v499_v25 = vmul.f32 %v2098_v48, %v2098_v48  ;;  %v495_v48 = vmul.f32 %v2094_v39, %v2094_v39 }
  0xea   :  { %v507_v49 = vmul.f32 %v387_v45, %v387_v45 }
  0xeb   :  { %v2106_v32 = vadd.f32 %v512_v31, %v496_v18 }
  0xec   :  { %v2131_v10 = vadd.f32 %v507_v49, %v491_v62 }
  0xed   :  { %1311 = vrsqrt.f32 %v2106_v32  ;;  %vm628_vm3 = vcmp.eq.f32.partialorder %v2106_v32, inf  ;;  %vm630_vm9 = vcmp.eq.f32.partialorder %v2106_v32, 0.0 }
  0xee   :  { %v436_v17 = vpop.f32.mrf.mxu2  ;;  %v477_v20 = vpop.f32.mrf.mxu3 }
  0xef   :  { %v348_v21 = vpop.f32.mrf.mxu0  ;;  %v389_v24 = vpop.f32.mrf.mxu1  ;;  %v478_v30 = vadd.f32 %v477_v20, %v436_v17 }
  0xf0   :  { %v390_v54 = vadd.f32 %v389_v24, %v348_v21  ;;  %v493_v24 = vmul.f32 %v2088_v35, %v2088_v35 }
  0xf1   :  { %v514_v22 = vmul.f32 %v478_v30, %v478_v30 }
  0xf2   :  { %v509_v20 = vmul.f32 %v390_v54, %v390_v54 }
  0xf3   :  { %v2108_v0 = vadd.f32 %v514_v22, %v498_v27  ;;  %v2117_v28 = vpop.eup %1311 }
  0xf4   :  { %v622_v61 = vmul.f32 %v2117_v28, %v2106_v32  ;;  %v2155_v18 = vadd.f32 %v509_v20, %v493_v24 }
  0xf5   :  { %1313 = vrsqrt.f32 %v2108_v0  ;;  %vm652_vm1 = vcmp.eq.f32.partialorder %v2108_v0, inf  ;;  %vm654_vm8 = vcmp.eq.f32.partialorder %v2108_v0, 0.0 }
  0xf6   :  { %v439_v4 = vpop.f32.mrf.mxu2  ;;  %v480_v5 = vpop.f32.mrf.mxu3  ;;  %v623_v26 = vmul.f32 %v2117_v28, %v622_v61 }
  0xf7   :  { %v481_v9 = vadd.f32 %v480_v5, %v439_v4  ;;  %v351_v13 = vpop.f32.mrf.mxu0  ;;  %v392_v12 = vpop.f32.mrf.mxu1  ;;  %v497_v4 = vmul.f32 %v2096_v44, %v2096_v44 }
  0xf8   :  { %v393_v2 = vadd.f32 %v392_v12, %v351_v13 }
  0xf9   :  { %v516_v23 = vmul.f32 %v481_v9, %v481_v9 }
  0xfa   :  { %v511_v5 = vmul.f32 %v393_v2, %v393_v2 }
  0xfb   :  { %v2110_v36 = vadd.f32 %v516_v23, %v500_v34  ;;  %v2120_v29 = vpop.eup %1313  ;;  %v624_v23 = vmul.f32 0.5, %v623_v26 }
  0xfc   :  { %v646_v7 = vmul.f32 %v2120_v29, %v2108_v0 }
  0xfd   :  { %1315 = vrsqrt.f32 %v2110_v36  ;;  %vm676_vm0 = vcmp.eq.f32.partialorder %v2110_v36, inf  ;;  %vm678_vm7 = vcmp.eq.f32.partialorder %v2110_v36, 0.0 }
  0xfe   :  { %v442_v38 = vpop.f32.mrf.mxu2  ;;  %v483_v14 = vpop.f32.mrf.mxu3  ;;  %v647_v8 = vmul.f32 %v2120_v29, %v646_v7  ;;  %v490_v7 = vmul.f32 %v2080_v19, %v2080_v19 }
  0xff   :  { %v484_v15 = vadd.f32 %v483_v14, %v442_v38  ;;  %v354_v40 = vpop.f32.mrf.mxu0  ;;  %v395_v42 = vpop.f32.mrf.mxu1  ;;  %v501_v38 = vmul.f32 %v2100_v53, %v2100_v53  ;;  %v2161_v14 = vadd.f32 %v511_v5, %v495_v48 }
 0x100   :  { %v396_v60 = vadd.f32 %v395_v42, %v354_v40 }
 0x101   :  { %v518_v43 = vmul.f32 %v484_v15, %v484_v15  ;;  %v648_v15 = vmul.f32 0.5, %v647_v8  ;;  %vm616_vm10 = vcmp.eq.f32.partialorder %v2161_v14, inf }
 0x102   :  { %v513_v30 = vmul.f32 %v396_v60, %v396_v60 }
 0x103   :  { %v2115_v46 = vadd.f32 %v518_v43, %v502_v41  ;;  %v2122_v52 = vpop.eup %1315  ;;  %v625_v43 = vsub.f32 1.5, %v624_v23 }
 0x104   :  { %v670_v16 = vmul.f32 %v2122_v52, %v2110_v36  ;;  %v2157_v27 = vadd.f32 %v513_v30, %v497_v4 }
 0x105   :  { %1317 = vrsqrt.f32 %v2115_v46  ;;  %v626_v61 = vmul.f32 %v2117_v28, %v625_v43  ;;  %v631_v28 = vand.u32 2147483648, %v2106_v32  ;;  %vm700_vm2 = vcmp.eq.f32.partialorder %v2115_v46, inf }
 0x106   :  { %v445_v50 = vpop.f32.mrf.mxu2  ;;  %v486_v51 = vpop.f32.mrf.mxu3  ;;  %1319 = vrsqrt.f32 %v2104_v6  ;;  %v671_v12 = vmul.f32 %v2122_v52, %v670_v16  ;;  %vm702_vm6 = vcmp.eq.f32.partialorder %v2115_v46, 0.0 }
 0x107   :  { %v487_v55 = vadd.f32 %v486_v51, %v445_v50  ;;  %v357_v56 = vpop.f32.mrf.mxu0  ;;  %v398_v57 = vpop.f32.mrf.mxu1  ;;  %v649_v50 = vsub.f32 1.5, %v648_v15  ;;  %v627_v19 = vmul.f32 %v626_v61, %v2106_v32 }
 0x108   :  { %v399_v63 = vadd.f32 %v398_v57, %v357_v56  ;;  %v672_v42 = vmul.f32 0.5, %v671_v12 }
 0x109   :  { %v520_v3 = vmul.f32 %v487_v55, %v487_v55  ;;  %v650_v16 = vmul.f32 %v2120_v29, %v649_v50 }
 0x10a   :  { %v515_v11 = vmul.f32 %v399_v63, %v399_v63  ;;  %v673_v54 = vsub.f32 1.5, %v672_v42 }
 0x10b   :  { %v1318_v17 = vpop.eup %1317  ;;  %v2135_v21 = vadd.f32 %v520_v3, %v504_v59 }
 0x10c   :  { %v694_v31 = vmul.f32 %v1318_v17, %v2115_v46  ;;  %v2147_v9 = vadd.f32 %v515_v11, %v499_v25  ;;  %v2151_v35 = vpop.eup %1319  ;;  %v503_v11 = vmul.f32 %v2102_v58, %v2102_v58  ;;  %v674_v25 = vmul.f32 %v2122_v52, %v673_v54 }
 0x10d   :  { %1321 = vrsqrt.f32 %v2135_v21  ;;  %v538_v39 = vmul.f32 %v2151_v35, %v2104_v6  ;;  %vm724_vm4 = vcmp.eq.f32.partialorder %v2135_v21, inf  ;;  %vm726_vm5 = vcmp.eq.f32.partialorder %v2135_v21, 0.0 }
 0x10e   :  { %v695_v13 = vmul.f32 %v1318_v17, %v694_v31  ;;  %1323 = vrsqrt.f32 %v2131_v10  ;;  %vm664_vm14 = vcmp.eq.f32.partialorder %v2147_v9, inf }
 0x10f   :  { %v360_v44 = vpop.f32.mrf.mxu0  ;;  %v401_v22 = vpop.f32.mrf.mxu1  ;;  %1325 = vrsqrt.f32 %v2147_v9  ;;  %v539_v55 = vmul.f32 %v2151_v35, %v538_v39 }
 0x110   :  { %v402_v34 = vadd.f32 %v401_v22, %v360_v44  ;;  %v696_v1 = vmul.f32 0.5, %v695_v13  ;;  %1327 = vrsqrt.f32 %v2155_v18  ;;  %v651_v13 = vmul.f32 %v650_v16, %v2108_v0 }
 0x111   :  { %1329 = vrsqrt.f32 %v2157_v27  ;;  %v2192_v30 = vmul.f32 0.5, %v539_v55  ;;  %v675_v22 = vmul.f32 %v674_v25, %v2110_v36 }
 0x112   :  { %v517_v40 = vmul.f32 %v402_v34, %v402_v34  ;;  %v697_v49 = vsub.f32 1.5, %v696_v1  ;;  %1331 = vrsqrt.f32 %v2161_v14 }
 0x113   :  { %v1322_v41 = vpop.eup %1321  ;;  %v677_v54 = vsel %vm676_vm0, %v2110_v36, %v675_v22  ;;  %vm640_vm0 = vcmp.eq.f32.partialorder %v2157_v27, inf }
 0x114   :  { %v2167_v45 = vpop.eup %1323  ;;  %v2169_v47 = vadd.f32 %v517_v40, %v501_v38  ;;  %v718_v53 = vmul.f32 %v1322_v41, %v2135_v21  ;;  %v698_v2 = vmul.f32 %v1318_v17, %v697_v49  ;;  %v727_v38 = vand.u32 2147483648, %v2135_v21 }
 0x115   :  { %v562_v62 = vmul.f32 %v2167_v45, %v2131_v10  ;;  %v2179_v59 = vpop.eup %1325 }
 0x116   :  { %v719_v51 = vmul.f32 %v1322_v41, %v718_v53  ;;  %1333 = vrsqrt.f32 %v2169_v47  ;;  %v2181_v3 = vpop.eup %1327  ;;  %v658_v58 = vmul.f32 %v2179_v59, %v2147_v9  ;;  %v699_v5 = vmul.f32 %v698_v2, %v2115_v46 }
 0x117   :  { %v363_v56 = vpop.f32.mrf.mxu0  ;;  %v404_v57 = vpop.f32.mrf.mxu1  ;;  %v563_v29 = vmul.f32 %v2167_v45, %v562_v62  ;;  %v586_v8 = vmul.f32 %v2181_v3, %v2155_v18  ;;  %v703_v53 = vand.u32 2147483648, %v2115_v46  ;;  %vm688_vm12 = vcmp.eq.f32.partialorder %v2169_v47, inf }
 0x118   :  { %v405_v60 = vadd.f32 %v404_v57, %v363_v56  ;;  %v720_v63 = vmul.f32 0.5, %v719_v51  ;;  %v2189_v20 = vpop.eup %1329  ;;  %v659_v40 = vmul.f32 %v2179_v59, %v658_v58  ;;  %v679_v56 = vand.u32 2147483648, %v2110_v36 }
 0x119   :  { %v2194_v17 = vpop.eup %1331  ;;  %v634_v48 = vmul.f32 %v2189_v20, %v2157_v27  ;;  %v629_v36 = vsel %vm628_vm3, %v2106_v32, %v627_v19  ;;  %v564_v25 = vmul.f32 0.5, %v563_v29  ;;  %v494_v32 = vmul.f32 %v2092_v37, %v2092_v37 }
 0x11a   :  { %v519_v26 = vmul.f32 %v405_v60, %v405_v60  ;;  %v721_v24 = vsub.f32 1.5, %v720_v63  ;;  %v610_v23 = vmul.f32 %v2194_v17, %v2161_v14  ;;  %v660_v57 = vmul.f32 0.5, %v659_v40 }
 0x11b   :  { %v635_v50 = vmul.f32 %v2189_v20, %v634_v48  ;;  %v655_v60 = vand.u32 2147483648, %v2108_v0  ;;  %v680_v63 = vsel %vm678_vm7, %v679_v56, %v677_v54  ;;  %vm690_vm15 = vcmp.eq.f32.partialorder %v2169_v47, 0.0 }
 0x11c   :  { %v2202_v31 = vpop.eup %1333  ;;  %v2204_v4 = vadd.f32 %v519_v26, %v503_v11  ;;  %v722_v52 = vmul.f32 %v1322_v41, %v721_v24  ;;  %v701_v41 = vsel %vm700_vm2, %v2115_v46, %v699_v5  ;;  %v611_v61 = vmul.f32 %v2194_v17, %v610_v23 }
 0x11d   :  { %v682_v12 = vmul.f32 %v2202_v31, %v2169_v47  ;;  %v704_v55 = vsel %vm702_vm6, %v703_v53, %v701_v41  ;;  %v653_v46 = vsel %vm652_vm1, %v2108_v0, %v651_v13  ;;  %v636_v16 = vmul.f32 0.5, %v635_v50 }
 0x11e   :  { %1335 = vrsqrt.f32 %v2204_v4  ;;  %v723_v44 = vmul.f32 %v722_v52, %v2135_v21  ;;  %v656_v5 = vsel %vm654_vm8, %v655_v60, %v653_v46  ;;  %v661_v13 = vsub.f32 1.5, %v660_v57 }
 0x11f   :  { %v424_v34 = vpop.f32.mrf.mxu0  ;;  %v465_v1 = vpop.f32.mrf.mxu1  ;;  %v683_v15 = vmul.f32 %v2202_v31, %v682_v12  ;;  %v612_v0 = vmul.f32 0.5, %v611_v61  ;;  %v492_v12 = vmul.f32 %v2086_v33, %v2086_v33  ;;  %v637_v29 = vsub.f32 1.5, %v636_v16 }
 0x120   :  { %v466_v42 = vadd.f32 %v465_v1, %v424_v34  ;;  %v725_v39 = vsel %vm724_vm4, %v2135_v21, %v723_v44  ;;  %v587_v21 = vmul.f32 %v2181_v3, %v586_v8  ;;  %v565_v23 = vsub.f32 1.5, %v564_v25 }
 0x121   :  { %v728_v43 = vsel %vm726_vm5, %v727_v38, %v725_v39  ;;  %v684_v49 = vmul.f32 0.5, %v683_v15  ;;  %v541_v34 = vsub.f32 1.5, %v2192_v30  ;;  %v662_v33 = vmul.f32 %v2179_v59, %v661_v13 }
 0x122   :  { %v506_v51 = vmul.f32 %v466_v42, %v466_v42  ;;  %769 = vmatpush.msrb.mxu1 %v728_v43  ;;  %v588_v24 = vmul.f32 0.5, %v587_v21  ;;  %v613_v38 = vsub.f32 1.5, %v612_v0  ;;  %v638_v42 = vmul.f32 %v2189_v20, %v637_v29 }
 0x123   :  { %v685_v11 = vsub.f32 1.5, %v684_v49  ;;  %v566_v30 = vmul.f32 %v2167_v45, %v565_v23  ;;  %v542_v39 = vmul.f32 %v2151_v35, %v541_v34  ;;  %v663_v53 = vmul.f32 %v662_v33, %v2147_v9  ;;  %v729_v23 = vld [vmem:[%s2703_s2] sm:$0xff] }
 0x124   :  { %v1336_v62 = vpop.eup %1335  ;;  %770 = vmatpush.msrb.mxu1 %v704_v55  ;;  %v2246_v26 = vadd.f32 %v506_v51, %v490_v7  ;;  %v632_v7 = vsel %vm630_vm9, %v631_v28, %v629_v36  ;;  %v589_v15 = vsub.f32 1.5, %v588_v24  ;;  %v614_v37 = vmul.f32 %v2194_v17, %v613_v38 }
 0x125   :  { %v706_v2 = vmul.f32 %v1336_v62, %v2204_v4  ;;  %v686_v19 = vmul.f32 %v2202_v31, %v685_v11  ;;  %vm712_vm11 = vcmp.eq.f32.partialorder %v2204_v4, inf  ;;  %v715_v45 = vand.u32 2147483648, %v2204_v4 }
 0x126   :  { %771 = vmatpush.msrb.mxu1 %v680_v63  ;;  %1337 = vrsqrt.f32 %v2246_v26  ;;  %v590_v49 = vmul.f32 %v2181_v3, %v589_v15  ;;  %vm714_vm13 = vcmp.eq.f32.partialorder %v2204_v4, 0.0  ;;  %v639_v54 = vmul.f32 %v638_v42, %v2157_v27  ;;  %v730_v42 = vld [vmem:[%s2703_s2 + $0x8] sm:$0xff] }
 0x127   :  { %v427_v58 = vpop.f32.mrf.mxu0  ;;  %v468_v52 = vpop.f32.mrf.mxu1  ;;  %v707_v8 = vmul.f32 %v1336_v62, %v706_v2  ;;  %v687_v31 = vmul.f32 %v686_v19, %v2169_v47  ;;  %v691_v3 = vand.u32 2147483648, %v2169_v47  ;;  %v665_v55 = vsel %vm664_vm14, %v2147_v9, %v663_v53 }
 0x128   :  { %v469_v48 = vadd.f32 %v468_v52, %v427_v58  ;;  %772 = vmatpush.msrb.mxu1 %v656_v5  ;;  %v615_v56 = vmul.f32 %v614_v37, %v2161_v14  ;;  %v667_v46 = vand.u32 2147483648, %v2147_v9  ;;  %vm666_vm1 = vcmp.eq.f32.partialorder %v2147_v9, 0.0 }
 0x129   :  { %v708_v44 = vmul.f32 0.5, %v707_v8  ;;  %v689_v51 = vsel %vm688_vm12, %v2169_v47, %v687_v31  ;;  %v641_v47 = vsel %vm640_vm0, %v2157_v27, %v639_v54  ;;  %v591_v60 = vmul.f32 %v590_v49, %v2155_v18 }
 0x12a   :  { %v508_v22 = vmul.f32 %v469_v48, %v469_v48  ;;  %773 = vmatpush.msrb.mxu1 %v632_v7  ;;  %v668_v2 = vsel %vm666_vm1, %v667_v46, %v665_v55  ;;  %v643_v11 = vand.u32 2147483648, %v2157_v27  ;;  %v567_v16 = vmul.f32 %v566_v30, %v2131_v10  ;;  %v795_v46 = vld [vmem:[%s2704_s3 + $0x38] sm:$0xff] }
 0x12b   :  { %v709_v1 = vsub.f32 1.5, %v708_v44  ;;  %vm642_vm2 = vcmp.eq.f32.partialorder %v2157_v27, 0.0  ;;  %v617_v9 = vsel %vm616_vm10, %v2161_v14, %v615_v56  ;;  %v619_v58 = vand.u32 2147483648, %v2161_v14  ;;  %v790_v56 = vld [vmem:[%s2704_s3 + $0x10] sm:$0xff] }
 0x12c   :  { %v2260_v40 = vadd.f32 %v508_v22, %v492_v12  ;;  %v2274_v50 = vpop.eup %1337  ;;  %v644_v25 = vsel %vm642_vm2, %v643_v11, %v641_v47  ;;  %vm592_vm3 = vcmp.eq.f32.partialorder %v2155_v18, inf  ;;  %vm618_vm4 = vcmp.eq.f32.partialorder %v2161_v14, 0.0 }
 0x12d   :  { %v710_v28 = vmul.f32 %v1336_v62, %v709_v1  ;;  %v692_v62 = vsel %vm690_vm15, %v691_v3, %v689_v51  ;;  %v593_v52 = vsel %vm592_vm3, %v2155_v18, %v591_v60  ;;  %v543_v5 = vmul.f32 %v542_v39, %v2104_v6 }
 0x12e   :  { %1339 = vrsqrt.f32 %v2260_v40  ;;  %v620_v8 = vsel %vm618_vm4, %v619_v58, %v617_v9  ;;  %v595_v13 = vand.u32 2147483648, %v2155_v18  ;;  %vm568_vm5 = vcmp.eq.f32.partialorder %v2131_v10, inf }
 0x12f   :  { %v430_v59 = vpop.f32.mrf.mxu0  ;;  %v471_v41 = vpop.f32.mrf.mxu1  ;;  %v711_v43 = vmul.f32 %v710_v28, %v2204_v4  ;;  %vm594_vm6 = vcmp.eq.f32.partialorder %v2155_v18, 0.0  ;;  %v569_v0 = vsel %vm568_vm5, %v2131_v10, %v567_v16  ;;  %v571_v14 = vand.u32 2147483648, %v2131_v10 }
 0x130   :  { %v472_v20 = vadd.f32 %v471_v41, %v430_v59  ;;  %v596_v7 = vsel %vm594_vm6, %v595_v13, %v593_v52  ;;  %vm544_vm7 = vcmp.eq.f32.partialorder %v2104_v6, inf  ;;  %vm570_vm8 = vcmp.eq.f32.partialorder %v2131_v10, 0.0 }
 0x131   :  { %v713_v35 = vsel %vm712_vm11, %v2204_v4, %v711_v43  ;;  %v550_v4 = vmul.f32 %v2274_v50, %v2246_v26  ;;  %v545_v44 = vsel %vm544_vm7, %v2104_v6, %v543_v5  ;;  %v572_v22 = vsel %vm570_vm8, %v571_v14, %v569_v0 }
 0x132   :  { %v510_v17 = vmul.f32 %v472_v20, %v472_v20  ;;  %v716_v21 = vsel %vm714_vm13, %v715_v45, %v713_v35  ;;  %v547_v18 = vand.u32 2147483648, %v2104_v6  ;;  %vm546_vm9 = vcmp.eq.f32.partialorder %v2104_v6, 0.0 }
 0x133   :  { %746 = vmatpush.msrb.mxu0 %v716_v21  ;;  %v551_v24 = vmul.f32 %v2274_v50, %v550_v4  ;;  %vm731_vm10 = vcmask 523264   ;;  %vm580_vm12 = vcmp.eq.f32.partialorder %v2260_v40, inf  ;;  %v583_v53 = vand.u32 2147483648, %v2260_v40  ;;  %v791_v4 = vld [vmem:[%s2704_s3 + $0x18] sm:$0xff] }
 0x134   :  { %v1340_v57 = vpop.eup %1339  ;;  %v2290_v61 = vadd.f32 %v510_v17, %v494_v32  ;;  %v548_v33 = vsel %vm546_vm9, %v547_v18, %v545_v44  ;;  %vm556_vm14 = vcmp.eq.f32.partialorder %v2246_v26, inf  ;;  %vm582_vm15 = vcmp.eq.f32.partialorder %v2260_v40, 0.0  ;;  %v1409_v44 = vld [vmem:[%s2702_s0 + $0x8] sm:$0xff] }
 0x135   :  { %747 = vmatpush.msrb.mxu0 %v692_v62  ;;  %v574_v63 = vmul.f32 %v1340_v57, %v2260_v40  ;;  %v552_v12 = vmul.f32 0.5, %v551_v24  ;;  %vm558_vm0 = vcmp.eq.f32.partialorder %v2246_v26, 0.0  ;;  %vm796_vm1 = vcmask 130048   ;;  %v794_v62 = vld [vmem:[%s2704_s3 + $0x30] sm:$0xff] }
 0x136   :  { %1341 = vrsqrt.f32 %v2290_v61  ;;  %vm604_vm11 = vcmp.eq.f32.partialorder %v2290_v61, inf  ;;  %v607_v39 = vand.u32 2147483648, %v2290_v61  ;;  %vm606_vm13 = vcmp.eq.f32.partialorder %v2290_v61, 0.0 }
 0x137   :  { %748 = vmatpush.msrb.mxu0 %v668_v2  ;;  %v575_v36 = vmul.f32 %v1340_v57, %v574_v63  ;;  %v553_v1 = vsub.f32 1.5, %v552_v12 }
 0x139   :  { %749 = vmatpush.msrb.mxu0 %v644_v25  ;;  %v576_v27 = vmul.f32 0.5, %v575_v36  ;;  %v554_v32 = vmul.f32 %v2274_v50, %v553_v1  ;;  %v559_v50 = vand.u32 2147483648, %v2246_v26 }
 0x13b   :  { %750 = vmatpush.msrb.mxu0 %v620_v8  ;;  %v577_v29 = vsub.f32 1.5, %v576_v27  ;;  %v555_v30 = vmul.f32 %v554_v32, %v2246_v26 }
 0x13c   :  { %v1342_v48 = vpop.eup %1341 }
 0x13d   :  { %751 = vmatpush.msrb.mxu0 %v596_v7  ;;  %v598_v19 = vmul.f32 %v1342_v48, %v2290_v61  ;;  %v578_v38 = vmul.f32 %v1340_v57, %v577_v29  ;;  %v557_v37 = vsel %vm556_vm14, %v2246_v26, %v555_v30  ;;  %v789_v26 = vld [vmem:[%s2704_s3 + $0x8] sm:$0xff]  ;;  %v792_v57 = vld [vmem:[%s2704_s3 + $0x20] sm:$0xff] }
 0x13e   :  { %v560_v20 = vsel %vm558_vm0, %v559_v50, %v557_v37 }
 0x13f   :  { %752 = vmatpush.msrb.mxu0 %v572_v22  ;;  %v599_v34 = vmul.f32 %v1342_v48, %v598_v19  ;;  %v579_v31 = vmul.f32 %v578_v38, %v2260_v40 }
 0x141   :  { %753 = vmatpush.msrb.mxu0 %v548_v33  ;;  %v600_v10 = vmul.f32 0.5, %v599_v34  ;;  %v581_v41 = vsel %vm580_vm12, %v2260_v40, %v579_v31  ;;  %v788_v40 = vld [vmem:[%s2704_s3] sm:$0xff] }
 0x142   :  { %1243 = vmatmul.msk.f32.vlgmr.msrb.gmra.mxu0 %vm731_vm10, %v729_v23  ;;  %v584_v49 = vsel %vm582_vm15, %v583_v53, %v581_v41  ;;  %v1407_v31 = vld [vmem:[%s2702_s0] sm:$0xff] }
 0x143   :  { %v601_v15 = vsub.f32 1.5, %v600_v10 }
 0x145   :  { %v602_v28 = vmul.f32 %v1342_v48, %v601_v15 }
 0x147   :  { %v603_v6 = vmul.f32 %v602_v28, %v2290_v61 }
 0x149   :  { %v605_v59 = vsel %vm604_vm11, %v2290_v61, %v603_v6  ;;  %v793_v61 = vld [vmem:[%s2704_s3 + $0x28] sm:$0xff] }
 0x14a   :  { %v608_v43 = vsel %vm606_vm13, %v607_v39, %v605_v59  ;;  %1244 = vmatmul.msk.f32.gmra.mxu0 %vm731_vm10, %v730_v42 }
 0x14b   :  { %774 = vmatpush.msrb.mxu1 %v608_v43 }
 0x14d   :  { %775 = vmatpush.msrb.mxu1 %v584_v49 }
 0x14f   :  { %776 = vmatpush.msrb.mxu1 %v560_v20 }
 0x150   :  { %1245 = vmatmul.msk.f32.vlgmr.msrb.gmra.mxu1 %vm731_vm10, %v729_v23 }
 0x158   :  { %1246 = vmatmul.msk.f32.gmra.mxu1 %vm731_vm10, %v730_v42 }
 0x1bf   :  { %v755_v45 = vpop.f32.mrf.mxu0 }
 0x1c0   :  { %v784_v51 = vmax.f32 %v755_v45, 0.0 }
 0x1c7   :  { %v758_v35 = vpop.f32.mrf.mxu0 }
 0x1c8   :  { %v786_v54 = vmax.f32 %v758_v35, 0.0 }
 0x1ca   :  { %835 = vmatpush.msra.mxu2 %v786_v54 }
 0x1cc   :  { %836 = vmatpush.msra.mxu2 %v784_v51 }
 0x1cd   :  { %v778_v17 = vpop.f32.mrf.mxu1  ;;  %1247 = vmatmul.msk.f32.vlgmr.msra.gmra.mxu2 %vm796_vm1, %v788_v40 }
 0x1ce   :  { %v785_v55 = vmax.f32 %v778_v17, 0.0 }
 0x1d5   :  { %v781_v21 = vpop.f32.mrf.mxu1  ;;  %1248 = vmatmul.msk.f32.gmra.mxu2 %vm796_vm1, %v789_v26 }
 0x1d6   :  { %v787_v3 = vmax.f32 %v781_v21, 0.0 }
 0x1d8   :  { %876 = vmatpush.msra.mxu3 %v787_v3 }
 0x1da   :  { %877 = vmatpush.msra.mxu3 %v785_v55 }
 0x1db   :  { %1255 = vmatmul.msk.f32.vlgmr.msra.gmra.mxu3 %vm796_vm1, %v788_v40 }
 0x1dd   :  { %1249 = vmatmul.msk.f32.gmra.mxu2 %vm796_vm1, %v790_v56 }
 0x1e3   :  { %1256 = vmatmul.msk.f32.gmra.mxu3 %vm796_vm1, %v789_v26 }
 0x1e5   :  { %1250 = vmatmul.msk.f32.gmra.mxu2 %vm796_vm1, %v791_v4 }
 0x1eb   :  { %1257 = vmatmul.msk.f32.gmra.mxu3 %vm796_vm1, %v790_v56 }
 0x1ed   :  { %1251 = vmatmul.msk.f32.gmra.mxu2 %vm796_vm1, %v792_v57 }
 0x1f3   :  { %1258 = vmatmul.msk.f32.gmra.mxu3 %vm796_vm1, %v791_v4 }
 0x1f5   :  { %1252 = vmatmul.msk.f32.gmra.mxu2 %vm796_vm1, %v793_v61 }
 0x1fb   :  { %1259 = vmatmul.msk.f32.gmra.mxu3 %vm796_vm1, %v792_v57 }
 0x1fd   :  { %1253 = vmatmul.msk.f32.gmra.mxu2 %vm796_vm1, %v794_v62 }
 0x203   :  { %1260 = vmatmul.msk.f32.gmra.mxu3 %vm796_vm1, %v793_v61 }
 0x205   :  { %1254 = vmatmul.msk.f32.gmra.mxu2 %vm796_vm1, %v795_v46 }
 0x20b   :  { %1261 = vmatmul.msk.f32.gmra.mxu3 %vm796_vm1, %v794_v62 }
 0x213   :  { %1262 = vmatmul.msk.f32.gmra.mxu3 %vm796_vm1, %v795_v46  ;;  %v1408_v46 = vld [vmem:[%s2702_s0 + $0x10] sm:$0xff] }
 0x250   :  { %v838_v47 = vpop.f32.mrf.mxu2 }
 0x251   :  { %v1263_v60 = vmul.f32 -1.442695, %v838_v47 }
 0x253   :  { %1343 = vpow2.f32 %v1263_v60 }
 0x258   :  { %v841_v63 = vpop.f32.mrf.mxu2 }
 0x259   :  { %v1344_v2 = vpop.eup %1343  ;;  %v1265_v11 = vmul.f32 -1.442695, %v841_v63 }
 0x25a   :  { %v951_v16 = vadd.f32 1.0, %v1344_v2 }
 0x25b   :  { %1345 = vpow2.f32 %v1265_v11 }
 0x25c   :  { %1347 = vrcp.f32 %v951_v16  ;;  %v978_v8 = vand.u32 2147483648, %v951_v16  ;;  %vm972_vm2 = vweird.f32 %v951_v16  ;;  %v976_v0 = vand.u32 2147483647, %v951_v16 }
 0x25e   :  { %v879_v9 = vpop.f32.mrf.mxu3  ;;  %v979_v19 = vor.u32 1.1754944e-38, %v978_v8  ;;  %vm977_vm5 = vcmp.eq.f32.partialorder %v976_v0, 8.507059e+37 }
 0x25f   :  { %v1264_v36 = vmul.f32 -1.442695, %v879_v9 }
 0x260   :  { %v844_v24 = vpop.f32.mrf.mxu2 }
 0x261   :  { %v1346_v25 = vpop.eup %1345  ;;  %1349 = vpow2.f32 %v1264_v36  ;;  %v1267_v58 = vmul.f32 -1.442695, %v844_v24 }
 0x262   :  { %v1348_v52 = vpop.eup %1347  ;;  %v953_v5 = vadd.f32 1.0, %v1346_v25 }
 0x263   :  { %v968_v27 = vmul.f32 %v1348_v52, %v951_v16  ;;  %1351 = vpow2.f32 %v1267_v58  ;;  %vm973_vm3 = vweird.f32 %v1348_v52 }
 0x264   :  { %1353 = vrcp.f32 %v953_v5  ;;  %vm2388_vm4 = vmor %vm972_vm2, %vm973_vm3  ;;  %vm1002_vm6 = vweird.f32 %v953_v5  ;;  %v1006_v32 = vand.u32 2147483647, %v953_v5  ;;  %v1008_v28 = vand.u32 2147483648, %v953_v5 }
 0x265   :  { %v969_v13 = vsub.f32 1.0, %v968_v27 }
 0x266   :  { %v882_v12 = vpop.f32.mrf.mxu3  ;;  %v1009_v49 = vor.u32 1.1754944e-38, %v1008_v28  ;;  %vm1007_vm9 = vcmp.eq.f32.partialorder %v1006_v32, 8.507059e+37 }
 0x267   :  { %v1350_v48 = vpop.eup %1349  ;;  %v970_v7 = vmul.f32 %v1348_v52, %v969_v13  ;;  %v1266_v14 = vmul.f32 -1.442695, %v882_v12 }
 0x268   :  { %v2392_v29 = vadd.f32 1.0, %v1350_v48  ;;  %v847_v22 = vpop.f32.mrf.mxu2 }
 0x269   :  { %v1352_v18 = vpop.eup %1351  ;;  %v971_v23 = vadd.f32 %v1348_v52, %v970_v7  ;;  %1355 = vpow2.f32 %v1266_v14  ;;  %v1269_v34 = vmul.f32 -1.442695, %v847_v22 }
 0x26a   :  { %v1354_v1 = vpop.eup %1353  ;;  %1357 = vrcp.f32 %v2392_v29  ;;  %v2397_v38 = vadd.f32 1.0, %v1352_v18  ;;  %v991_v53 = vand.u32 2147483647, %v2392_v29  ;;  %vm987_vm10 = vweird.f32 %v2392_v29 }
 0x26b   :  { %v975_v33 = vsel %vm2388_vm4, %v1348_v52, %v971_v23  ;;  %v998_v10 = vmul.f32 %v1354_v1, %v953_v5  ;;  %1359 = vpow2.f32 %v1269_v34  ;;  %vm1003_vm7 = vweird.f32 %v1354_v1 }
 0x26c   :  { %v980_v15 = vsel %vm977_vm5, %v979_v19, %v975_v33  ;;  %1361 = vrcp.f32 %v2397_v38  ;;  %vm2408_vm8 = vmor %vm1002_vm6, %vm1003_vm7  ;;  %v993_v54 = vand.u32 2147483648, %v2392_v29  ;;  %v1036_v40 = vand.u32 2147483647, %v2397_v38 }
 0x26d   :  { %v1207_v6 = vmul.f32 %v1407_v31, %v980_v15  ;;  %v999_v42 = vsub.f32 1.0, %v998_v10  ;;  %vm2423_vm11 = vcmp.eq.f32.partialorder %v991_v53, 8.507059e+37  ;;  %v1038_v61 = vand.u32 2147483648, %v2397_v38  ;;  %v1410_v15 = vld [vmem:[%s2702_s0 + $0x20] sm:$0xff] }
 0x26e   :  { %v885_v30 = vpop.f32.mrf.mxu3  ;;  %v994_v60 = vor.u32 1.1754944e-38, %v993_v54  ;;  %vm1032_vm13 = vweird.f32 %v2397_v38  ;;  %vm2437_vm15 = vcmp.eq.f32.partialorder %v1036_v40, 8.507059e+37 }
 0x26f   :  { %v1356_v39 = vpop.eup %1355  ;;  %1223 = vst [vmem:[%s2705_s4] sm:$0xff] %v1207_v6  ;;  %v1000_v59 = vmul.f32 %v1354_v1, %v999_v42  ;;  %v1268_v41 = vmul.f32 -1.442695, %v885_v30  ;;  %v1039_v58 = vor.u32 1.1754944e-38, %v1038_v61 }
 0x270   :  { %v1358_v43 = vpop.eup %1357  ;;  %v2412_v50 = vadd.f32 1.0, %v1356_v39  ;;  %v850_v20 = vpop.f32.mrf.mxu2 }
 0x271   :  { %v983_v45 = vmul.f32 %v1358_v43, %v2392_v29  ;;  %v1001_v35 = vadd.f32 %v1354_v1, %v1000_v59  ;;  %1363 = vpow2.f32 %v1268_v41  ;;  %v1360_v51 = vpop.eup %1359  ;;  %v1271_v55 = vmul.f32 -1.442695, %v850_v20 }
 0x272   :  { %1365 = vrcp.f32 %v2412_v50  ;;  %v1362_v17 = vpop.eup %1361  ;;  %v2421_v3 = vadd.f32 1.0, %v1360_v51  ;;  %vm988_vm12 = vweird.f32 %v1358_v43  ;;  %vm1017_vm1 = vweird.f32 %v2412_v50 }
 0x273   :  { %v984_v26 = vsub.f32 1.0, %v983_v45  ;;  %v1005_v21 = vsel %vm2408_vm8, %v1354_v1, %v1001_v35  ;;  %v1028_v57 = vmul.f32 %v1362_v17, %v2397_v38  ;;  %vm1033_vm14 = vweird.f32 %v1362_v17  ;;  %vm989_vm0 = vmor %vm987_vm10, %vm988_vm12 }
 0x274   :  { %v1010_v4 = vsel %vm1007_vm9, %v1009_v49, %v1005_v21  ;;  %1367 = vrcp.f32 %v2421_v3  ;;  %v1021_v13 = vand.u32 2147483647, %v2412_v50  ;;  %vm2452_vm2 = vmor %vm1032_vm13, %vm1033_vm14  ;;  %v1023_v48 = vand.u32 2147483648, %v2412_v50  ;;  %v1411_v21 = vld [vmem:[%s2702_s0 + $0x18] sm:$0xff] }
 0x275   :  { %v985_v62 = vmul.f32 %v1358_v43, %v984_v26  ;;  %v1209_v47 = vmul.f32 %v1408_v46, %v1010_v4  ;;  %v1029_v63 = vsub.f32 1.0, %v1028_v57  ;;  %1369 = vpow2.f32 %v1271_v55 }
 0x276   :  { %v888_v2 = vpop.f32.mrf.mxu3  ;;  %vm1062_vm3 = vweird.f32 %v2421_v3  ;;  %v1066_v22 = vand.u32 2147483647, %v2421_v3  ;;  %v1068_v34 = vand.u32 2147483648, %v2421_v3  ;;  %vm2479_vm6 = vcmp.eq.f32.partialorder %v1021_v13, 8.507059e+37 }
 0x277   :  { %v1364_v11 = vpop.eup %1363  ;;  %v986_v16 = vadd.f32 %v1358_v43, %v985_v62  ;;  %1225 = vst [vmem:[%s2705_s4 + $0x10] sm:$0xff] %v1209_v47  ;;  %v1270_v36 = vmul.f32 -1.442695, %v888_v2  ;;  %v1030_v25 = vmul.f32 %v1362_v17, %v1029_v63  ;;  %v1024_v59 = vor.u32 1.1754944e-38, %v1023_v48 }
 0x278   :  { %v1366_v24 = vpop.eup %1365  ;;  %v2445_v52 = vadd.f32 1.0, %v1364_v11  ;;  %v853_v5 = vpop.f32.mrf.mxu2  ;;  %vm2483_vm7 = vcmp.eq.f32.partialorder %v1066_v22, 8.507059e+37  ;;  %v1069_v54 = vor.u32 1.1754944e-38, %v1068_v34 }
 0x279   :  { %v990_v27 = vsel %vm989_vm0, %v1358_v43, %v986_v16  ;;  %v1013_v8 = vmul.f32 %v1366_v24, %v2412_v50  ;;  %1371 = vpow2.f32 %v1270_v36  ;;  %v1031_v7 = vadd.f32 %v1362_v17, %v1030_v25 }
 0x27a   :  { %v995_v12 = vsel %vm2423_vm11, %v994_v60, %v990_v27  ;;  %1373 = vrcp.f32 %v2445_v52  ;;  %v1368_v14 = vpop.eup %1367  ;;  %v1273_v1 = vmul.f32 -1.442695, %v853_v5  ;;  %vm1018_vm4 = vweird.f32 %v1366_v24  ;;  %v1412_v60 = vld [vmem:[%s2702_s0 + $0x30] sm:$0xff] }
 0x27b   :  { %v1208_v19 = vmul.f32 %v1409_v44, %v995_v12  ;;  %v1014_v29 = vsub.f32 1.0, %v1013_v8  ;;  %v1035_v18 = vsel %vm2452_vm2, %v1362_v17, %v1031_v7  ;;  %v1058_v23 = vmul.f32 %v1368_v14, %v2421_v3  ;;  %v1370_v33 = vpop.eup %1369  ;;  %vm1019_vm8 = vmor %vm1017_vm1, %vm1018_vm4 }
 0x27c   :  { %v1040_v38 = vsel %vm2437_vm15, %v1039_v58, %v1035_v18  ;;  %vm1063_vm5 = vweird.f32 %v1368_v14  ;;  %v2477_v31 = vadd.f32 1.0, %v1370_v33  ;;  %1375 = vpow2.f32 %v1273_v1 }
 0x27d   :  { %1224 = vst [vmem:[%s2705_s4 + $0x8] sm:$0xff] %v1208_v19  ;;  %v1015_v10 = vmul.f32 %v1366_v24, %v1014_v29  ;;  %v1211_v32 = vmul.f32 %v1410_v15, %v1040_v38  ;;  %v1059_v28 = vsub.f32 1.0, %v1058_v23  ;;  %v1051_v51 = vand.u32 2147483647, %v2445_v52  ;;  %vm2501_vm9 = vmor %vm1062_vm3, %vm1063_vm5 }
 0x27e   :  { %v891_v6 = vpop.f32.mrf.mxu3  ;;  %1377 = vrcp.f32 %v2477_v31  ;;  %v1053_v17 = vand.u32 2147483648, %v2445_v52  ;;  %vm1047_vm10 = vweird.f32 %v2445_v52  ;;  %vm1092_vm13 = vweird.f32 %v2477_v31 }
 0x27f   :  { %v1372_v42 = vpop.eup %1371  ;;  %v1016_v30 = vadd.f32 %v1366_v24, %v1015_v10  ;;  %1227 = vst [vmem:[%s2705_s4 + $0x20] sm:$0xff] %v1211_v32  ;;  %v1060_v53 = vmul.f32 %v1368_v14, %v1059_v28  ;;  %v1272_v49 = vmul.f32 -1.442695, %v891_v6  ;;  %vm2518_vm12 = vcmp.eq.f32.partialorder %v1051_v51, 8.507059e+37 }
 0x280   :  { %v1374_v43 = vpop.eup %1373  ;;  %v2493_v37 = vadd.f32 1.0, %v1372_v42  ;;  %v856_v20 = vpop.f32.mrf.mxu2  ;;  %v1054_v47 = vor.u32 1.1754944e-38, %v1053_v17  ;;  %v1096_v36 = vand.u32 2147483647, %v2477_v31  ;;  %v1098_v58 = vand.u32 2147483648, %v2477_v31 }
 0x281   :  { %v1020_v45 = vsel %vm1019_vm8, %v1366_v24, %v1016_v30  ;;  %v1043_v35 = vmul.f32 %v1374_v43, %v2445_v52  ;;  %v1061_v26 = vadd.f32 %v1368_v14, %v1060_v53  ;;  %vm1048_vm11 = vweird.f32 %v1374_v43 }
 0x282   :  { %v1025_v40 = vsel %vm2479_vm6, %v1024_v59, %v1020_v45  ;;  %1379 = vrcp.f32 %v2493_v37  ;;  %v1376_v3 = vpop.eup %1375  ;;  %vm1049_vm14 = vmor %vm1047_vm10, %vm1048_vm11  ;;  %vm1077_vm15 = vweird.f32 %v2493_v37  ;;  %v1275_v5 = vmul.f32 -1.442695, %v856_v20 }
 0x283   :  { %v1210_v55 = vmul.f32 %v1411_v21, %v1025_v40  ;;  %v1044_v56 = vsub.f32 1.0, %v1043_v35  ;;  %v1065_v4 = vsel %vm2501_vm9, %v1368_v14, %v1061_v26  ;;  %1381 = vpow2.f32 %v1272_v49  ;;  %v1413_v14 = vld [vmem:[%s2702_s0 + $0x28] sm:$0xff]  ;;  %v1414_v49 = vld [vmem:[%s2702_s0 + $0x40] sm:$0xff] }
 0x284   :  { %v1070_v62 = vsel %vm2483_vm7, %v1069_v54, %v1065_v4  ;;  %v1378_v46 = vpop.eup %1377  ;;  %v2528_v2 = vadd.f32 1.0, %v1376_v3  ;;  %v1081_v48 = vand.u32 2147483647, %v2493_v37  ;;  %v1083_v7 = vand.u32 2147483648, %v2493_v37  ;;  %v1415_v54 = vld [vmem:[%s2702_s0 + $0x38] sm:$0xff] }
 0x285   :  { %1226 = vst [vmem:[%s2705_s4 + $0x18] sm:$0xff] %v1210_v55  ;;  %v1045_v57 = vmul.f32 %v1374_v43, %v1044_v56  ;;  %v1213_v63 = vmul.f32 %v1412_v60, %v1070_v62  ;;  %v1088_v9 = vmul.f32 %v1378_v46, %v2477_v31  ;;  %vm1093_vm0 = vweird.f32 %v1378_v46 }
 0x286   :  { %v894_v11 = vpop.f32.mrf.mxu3  ;;  %1383 = vrcp.f32 %v2528_v2  ;;  %vm2553_vm1 = vmor %vm1092_vm13, %vm1093_vm0  ;;  %vm2557_vm2 = vcmp.eq.f32.partialorder %v1096_v36, 8.507059e+37  ;;  %v1099_v34 = vor.u32 1.1754944e-38, %v1098_v58  ;;  %vm2565_vm4 = vcmp.eq.f32.partialorder %v1081_v48, 8.507059e+37 }
 0x287   :  { %v1046_v16 = vadd.f32 %v1374_v43, %v1045_v57  ;;  %v1274_v24 = vmul.f32 -1.442695, %v894_v11  ;;  %1229 = vst [vmem:[%s2705_s4 + $0x30] sm:$0xff] %v1213_v63  ;;  %v1089_v13 = vsub.f32 1.0, %v1088_v9  ;;  %v1084_v32 = vor.u32 1.1754944e-38, %v1083_v7 }
 0x288   :  { %v1380_v25 = vpop.eup %1379  ;;  %v859_v0 = vpop.f32.mrf.mxu2  ;;  %vm1122_vm5 = vweird.f32 %v2528_v2  ;;  %v1126_v30 = vand.u32 2147483647, %v2528_v2  ;;  %v1128_v41 = vand.u32 2147483648, %v2528_v2 }
 0x289   :  { %v1050_v27 = vsel %vm1049_vm14, %v1374_v43, %v1046_v16  ;;  %v1073_v8 = vmul.f32 %v1380_v25, %v2493_v37  ;;  %v1382_v12 = vpop.eup %1381  ;;  %1385 = vpow2.f32 %v1274_v24  ;;  %v1090_v29 = vmul.f32 %v1378_v46, %v1089_v13  ;;  %v1416_v16 = vld [vmem:[%s2702_s0 + $0x50] sm:$0xff] }
 0x28a   :  { %v1055_v52 = vsel %vm2518_vm12, %v1054_v47, %v1050_v27  ;;  %v2549_v22 = vadd.f32 1.0, %v1382_v12  ;;  %1387 = vpow2.f32 %v1275_v5  ;;  %v1277_v1 = vmul.f32 -1.442695, %v859_v0 }
 0x28b   :  { %v1212_v44 = vmul.f32 %v1413_v14, %v1055_v52  ;;  %v1074_v19 = vsub.f32 1.0, %v1073_v8  ;;  %vm1078_vm3 = vweird.f32 %v1380_v25  ;;  %v1091_v10 = vadd.f32 %v1378_v46, %v1090_v29 }
 0x28c   :  { %1389 = vrcp.f32 %v2549_v22  ;;  %v1384_v38 = vpop.eup %1383  ;;  %vm1079_vm6 = vmor %vm1077_vm15, %vm1078_vm3  ;;  %v1129_v56 = vor.u32 1.1754944e-38, %v1128_v41  ;;  %vm1127_vm9 = vcmp.eq.f32.partialorder %v1126_v30, 8.507059e+37  ;;  %v1111_v62 = vand.u32 2147483647, %v2549_v22 }
 0x28d   :  { %1228 = vst [vmem:[%s2705_s4 + $0x28] sm:$0xff] %v1212_v44  ;;  %v1075_v33 = vmul.f32 %v1380_v25, %v1074_v19  ;;  %1391 = vpow2.f32 %v1277_v1  ;;  %v1095_v6 = vsel %vm2553_vm1, %v1378_v46, %v1091_v10  ;;  %v1118_v42 = vmul.f32 %v1384_v38, %v2528_v2  ;;  %v1417_v44 = vld [vmem:[%s2702_s0 + $0x48] sm:$0xff] }
 0x28e   :  { %v897_v28 = vpop.f32.mrf.mxu3  ;;  %v1100_v59 = vsel %vm2557_vm2, %v1099_v34, %v1095_v6  ;;  %vm1123_vm7 = vweird.f32 %v1384_v38  ;;  %v1113_v46 = vand.u32 2147483648, %v2549_v22  ;;  %vm1107_vm11 = vweird.f32 %v2549_v22 }
 0x28f   :  { %v1076_v31 = vadd.f32 %v1380_v25, %v1075_v33  ;;  %v1386_v39 = vpop.eup %1385  ;;  %v1276_v43 = vmul.f32 -1.442695, %v897_v28  ;;  %v1215_v20 = vmul.f32 %v1414_v49, %v1100_v59  ;;  %v1119_v45 = vsub.f32 1.0, %v1118_v42  ;;  %vm2597_vm8 = vmor %vm1122_vm5, %vm1123_vm7 }
 0x290   :  { %v2582_v35 = vadd.f32 1.0, %v1386_v39  ;;  %v1388_v51 = vpop.eup %1387  ;;  %vm1112_vm13 = vcmp.eq.f32.partialorder %v1111_v62, 8.507059e+37  ;;  %v1114_v27 = vor.u32 1.1754944e-38, %v1113_v46  ;;  %v1420_v62 = vld [vmem:[%s2702_s0 + $0x70] sm:$0xff] }
 0x291   :  { %v1080_v53 = vsel %vm1079_vm6, %v1380_v25, %v1076_v31  ;;  %1393 = vpow2.f32 %v1276_v43  ;;  %1231 = vst [vmem:[%s2705_s4 + $0x40] sm:$0xff] %v1215_v20  ;;  %v1120_v17 = vmul.f32 %v1384_v38, %v1119_v45  ;;  %v2604_v4 = vadd.f32 1.0, %v1388_v51  ;;  %v1418_v43 = vld [vmem:[%s2702_s0 + $0x58] sm:$0xff] }
 0x292   :  { %v1085_v37 = vsel %vm2565_vm4, %v1084_v32, %v1080_v53  ;;  %v1390_v50 = vpop.eup %1389  ;;  %1395 = vrcp.f32 %v2582_v35  ;;  %v1143_v36 = vand.u32 2147483648, %v2582_v35  ;;  %vm1137_vm14 = vweird.f32 %v2582_v35 }
 0x293   :  { %v1214_v40 = vmul.f32 %v1415_v54, %v1085_v37  ;;  %v1392_v26 = vpop.eup %1391  ;;  %v1103_v21 = vmul.f32 %v1390_v50, %v2549_v22  ;;  %v1121_v3 = vadd.f32 %v1384_v38, %v1120_v17  ;;  %1397 = vrcp.f32 %v2604_v4 }
 0x294   :  { %v2606_v57 = vadd.f32 1.0, %v1392_v26  ;;  %vm1108_vm10 = vweird.f32 %v1390_v50  ;;  %v1141_v0 = vand.u32 2147483647, %v2582_v35  ;;  %v1144_v48 = vor.u32 1.1754944e-38, %v1143_v36 }
 0x295   :  { %1230 = vst [vmem:[%s2705_s4 + $0x38] sm:$0xff] %v1214_v40  ;;  %v1104_v61 = vsub.f32 1.0, %v1103_v21  ;;  %v1125_v47 = vsel %vm2597_vm8, %v1384_v38, %v1121_v3  ;;  %vm1109_vm12 = vmor %vm1107_vm11, %vm1108_vm10  ;;  %vm1152_vm15 = vweird.f32 %v2604_v4  ;;  %v1156_v18 = vand.u32 2147483647, %v2604_v4 }
 0x296   :  { %v1130_v2 = vsel %vm1127_vm9, %v1129_v56, %v1125_v47  ;;  %1399 = vrcp.f32 %v2606_v57  ;;  %v900_v5 = vpop.f32.mrf.mxu3  ;;  %v1158_v23 = vand.u32 2147483648, %v2604_v4  ;;  %v1188_v1 = vand.u32 2147483648, %v2606_v57  ;;  %v1419_v56 = vld [vmem:[%s2702_s0 + $0x60] sm:$0xff] }
 0x297   :  { %v1394_v60 = vpop.eup %1393  ;;  %v1105_v63 = vmul.f32 %v1390_v50, %v1104_v61  ;;  %v1217_v9 = vmul.f32 %v1416_v16, %v1130_v2  ;;  %v1278_v7 = vmul.f32 -1.442695, %v900_v5  ;;  %vm1182_vm3 = vweird.f32 %v2606_v57 }
 0x298   :  { %v1396_v11 = vpop.eup %1395  ;;  %v2618_v24 = vadd.f32 1.0, %v1394_v60  ;;  %v1186_v32 = vand.u32 2147483647, %v2606_v57  ;;  %vm1142_vm5 = vcmp.eq.f32.partialorder %v1141_v0, 8.507059e+37  ;;  %vm2651_vm7 = vcmp.eq.f32.partialorder %v1156_v18, 8.507059e+37 }
 0x299   :  { %v1106_v25 = vadd.f32 %v1390_v50, %v1105_v63  ;;  %v1133_v58 = vmul.f32 %v1396_v11, %v2582_v35  ;;  %1233 = vst [vmem:[%s2705_s4 + $0x50] sm:$0xff] %v1217_v9  ;;  %v1398_v12 = vpop.eup %1397  ;;  %vm1138_vm0 = vweird.f32 %v1396_v11  ;;  %v1159_v59 = vor.u32 1.1754944e-38, %v1158_v23  ;;  %v1421_v63 = vld [vmem:[%s2702_s0 + $0x68] sm:$0xff] }
 0x29a   :  { %1401 = vrcp.f32 %v2618_v24  ;;  %v1148_v22 = vmul.f32 %v1398_v12, %v2604_v4  ;;  %vm1153_vm1 = vweird.f32 %v1398_v12  ;;  %vm1139_vm2 = vmor %vm1137_vm14, %vm1138_vm0  ;;  %v1189_v35 = vor.u32 1.1754944e-38, %v1188_v1 }
 0x29b   :  { %v1110_v8 = vsel %vm1109_vm12, %v1390_v50, %v1106_v25  ;;  %v1134_v13 = vsub.f32 1.0, %v1133_v58  ;;  %1403 = vpow2.f32 %v1278_v7  ;;  %vm2647_vm6 = vmor %vm1152_vm15, %vm1153_vm1  ;;  %v1173_v51 = vand.u32 2147483648, %v2618_v24 }
 0x29c   :  { %v1115_v52 = vsel %vm1112_vm13, %v1114_v27, %v1110_v8  ;;  %v1400_v14 = vpop.eup %1399  ;;  %v1149_v10 = vsub.f32 1.0, %v1148_v22  ;;  %vm1187_vm9 = vcmp.eq.f32.partialorder %v1186_v32, 8.507059e+37  ;;  %v1171_v17 = vand.u32 2147483647, %v2618_v24 }
 0x29d   :  { %v1216_v19 = vmul.f32 %v1417_v44, %v1115_v52  ;;  %v1135_v29 = vmul.f32 %v1396_v11, %v1134_v13  ;;  %v1178_v34 = vmul.f32 %v1400_v14, %v2606_v57  ;;  %vm1183_vm4 = vweird.f32 %v1400_v14  ;;  %v1422_v13 = vld [vmem:[%s2702_s0 + $0x78] sm:$0xff] }
 0x29e   :  { %v1150_v31 = vmul.f32 %v1398_v12, %v1149_v10  ;;  %vm2661_vm8 = vmor %vm1182_vm3, %vm1183_vm4  ;;  %vm1167_vm11 = vweird.f32 %v2618_v24  ;;  %v1174_v61 = vor.u32 1.1754944e-38, %v1173_v51  ;;  %vm1172_vm13 = vcmp.eq.f32.partialorder %v1171_v17, 8.507059e+37 }
 0x29f   :  { %1232 = vst [vmem:[%s2705_s4 + $0x48] sm:$0xff] %v1216_v19  ;;  %v1136_v33 = vadd.f32 %v1396_v11, %v1135_v29  ;;  %v1179_v15 = vsub.f32 1.0, %v1178_v34 }
 0x2a0   :  { %v1402_v38 = vpop.eup %1401  ;;  %v1151_v49 = vadd.f32 %v1398_v12, %v1150_v31 }
 0x2a1   :  { %v1140_v28 = vsel %vm1139_vm2, %v1396_v11, %v1136_v33  ;;  %v1163_v6 = vmul.f32 %v1402_v38, %v2618_v24  ;;  %v1180_v41 = vmul.f32 %v1400_v14, %v1179_v15  ;;  %v1404_v50 = vpop.eup %1403  ;;  %vm1168_vm10 = vweird.f32 %v1402_v38 }
 0x2a2   :  { %v1145_v42 = vsel %vm1142_vm5, %v1144_v48, %v1140_v28  ;;  %v1155_v54 = vsel %vm2647_vm6, %v1398_v12, %v1151_v49  ;;  %v966_v55 = vadd.f32 1.0, %v1404_v50  ;;  %vm1169_vm12 = vmor %vm1167_vm11, %vm1168_vm10 }
 0x2a3   :  { %v1218_v53 = vmul.f32 %v1418_v43, %v1145_v42  ;;  %v1164_v20 = vsub.f32 1.0, %v1163_v6  ;;  %v1181_v37 = vadd.f32 %v1400_v14, %v1180_v41  ;;  %v1160_v26 = vsel %vm2651_vm7, %v1159_v59, %v1155_v54 }
 0x2a4   :  { %v1219_v3 = vmul.f32 %v1419_v56, %v1160_v26  ;;  %1405 = vrcp.f32 %v966_v55  ;;  %v1203_v36 = vand.u32 2147483648, %v966_v55  ;;  %v1201_v25 = vand.u32 2147483647, %v966_v55 }
 0x2a5   :  { %1234 = vst [vmem:[%s2705_s4 + $0x58] sm:$0xff] %v1218_v53  ;;  %v1165_v40 = vmul.f32 %v1402_v38, %v1164_v20  ;;  %v1185_v21 = vsel %vm2661_vm8, %v1400_v14, %v1181_v37  ;;  %vm1197_vm15 = vweird.f32 %v966_v55 }
 0x2a6   :  { %v1190_v57 = vsel %vm1187_vm9, %v1189_v35, %v1185_v21  ;;  %1235 = vst [vmem:[%s2705_s4 + $0x60] sm:$0xff] %v1219_v3  ;;  %v1204_v5 = vor.u32 1.1754944e-38, %v1203_v36  ;;  %vm1202_vm1 = vcmp.eq.f32.partialorder %v1201_v25, 8.507059e+37 }
 0x2a7   :  { %v1166_v4 = vadd.f32 %v1402_v38, %v1165_v40  ;;  %v1221_v46 = vmul.f32 %v1420_v62, %v1190_v57 }
 0x2a9   :  { %v1170_v47 = vsel %vm1169_vm12, %v1402_v38, %v1166_v4  ;;  %1237 = vst [vmem:[%s2705_s4 + $0x70] sm:$0xff] %v1221_v46 }
 0x2aa   :  { %v1175_v60 = vsel %vm1172_vm13, %v1174_v61, %v1170_v47  ;;  %v1406_v11 = vpop.eup %1405 }
 0x2ab   :  { %v1220_v2 = vmul.f32 %v1421_v63, %v1175_v60  ;;  %v1193_v16 = vmul.f32 %v1406_v11, %v966_v55  ;;  %vm1198_vm14 = vweird.f32 %v1406_v11 }
 0x2ac   :  { %vm1199_vm0 = vmor %vm1197_vm15, %vm1198_vm14 }
 0x2ad   :  { %1236 = vst [vmem:[%s2705_s4 + $0x68] sm:$0xff] %v1220_v2  ;;  %v1194_v9 = vsub.f32 1.0, %v1193_v16 }
 0x2af   :  { %v1195_v24 = vmul.f32 %v1406_v11, %v1194_v9 }
 0x2b1   :  { %v1196_v58 = vadd.f32 %v1406_v11, %v1195_v24 }
 0x2b3   :  { %v1200_v27 = vsel %vm1199_vm0, %v1406_v11, %v1196_v58 }
 0x2b4   :  { %v1205_v8 = vsel %vm1202_vm1, %v1204_v5, %v1200_v27 }
 0x2b5   :  { %v1222_v0 = vmul.f32 %v1422_v13, %v1205_v8 }
 0x2b7   :  { %1238 = vst [vmem:[%s2705_s4 + $0x78] sm:$0xff] %v1222_v0 }

</bundles_post_ra>
